<compile_context>
chip_gen: v7x
topology: tpu7x:2x2x1
jax: 0.10.0
libtpu: 0.0.40
codegen_flags: <defaults>
</compile_context>

<pallas_src>
import functools

import jax
import jax.numpy as jnp
import numpy as np
from jax.experimental import pallas as pl
from jax.experimental.pallas import tpu as pltpu

C1 = 0.01 ** 2
C2 = 0.03 ** 2


def _pool_reflect_matrix(n_in, patch_size):
    """(n_out, n_in) integer matrix M with M @ v == SumPool1d(P,1)(ReflectPad1d(P//2)(v)).

    The 1/P normalization is deliberately NOT folded in: integer entries are exactly
    representable in bf16, so bf16 MXU passes lose nothing on the matrix operand.
    """
    pad = patch_size // 2
    assert pad < n_in, "reflection pad must be smaller than the spatial size"
    n_pad = n_in + 2 * pad
    n_out = n_pad - patch_size + 1
    src = np.arange(n_pad) - pad
    src = np.abs(src)
    src = np.where(src >= n_in, 2 * (n_in - 1) - src, src)   # reflect, edge not repeated
    sel = np.zeros((n_pad, n_in), np.float64)
    sel[np.arange(n_pad), src] = 1.0
    band = np.zeros((n_out, n_pad), np.float64)
    for o in range(n_out):
        band[o, o:o + patch_size] = 1.0
    return (band @ sel).astype(np.float32)                   # integer-valued


def _split3_dot(a_f32, bf16_matmul):
    """f32-accurate matmul against a bf16-exact matrix using 3 native bf16 MXU passes.

    a_f32 ~= hi + mid + lo (each bf16, ~8 mantissa bits apiece).  Because the other
    operand is exactly representable in bf16, no cross terms are lost, so 3 passes
    reach f32-grade accuracy at half the MXU cost of precision=HIGHEST (6 passes).
    """
    hi = a_f32.astype(jnp.bfloat16)
    acc = bf16_matmul(hi)
    r = a_f32 - hi.astype(jnp.float32)           # exact (Sterbenz)
    mid = r.astype(jnp.bfloat16)
    acc = acc + bf16_matmul(mid)
    lo = (r - mid.astype(jnp.float32)).astype(jnp.bfloat16)
    return acc + bf16_matmul(lo)


def _ssim_kernel(x_ref, y_ref, r_ref, c_ref, o_ref, *, patch_size):
    B, H, W = x_ref.shape
    Ho, _ = r_ref.shape
    _, Wo = c_ref.shape
    G = 5 * B

    x = x_ref[...].astype(jnp.float32)           # (B, H, W)
    y = y_ref[...].astype(jnp.float32)
    rmat = r_ref[...]                            # (Ho, H)  bf16 integer window-sum matrix
    cmat = c_ref[...]                            # (W, Wo)  bf16 integer window-sum matrix

    # Fuse all five pooled statistics into one stack along the leading axis:
    # one big-M column matmul + one batched row matmul, no per-channel loops.
    stats = jnp.concatenate([x, y, x * x, y * y, x * y], axis=0)   # (5B, H, W)
    s2 = stats.reshape(G * H, W)    # layout-free when H % 8 == 0; Mosaic relayouts otherwise

    # Column pool: (5*B*H, W) @ (W, Wo), 3 bf16 passes.
    t = _split3_dot(
        s2, lambda a: jnp.dot(a, cmat, preferred_element_type=jnp.float32))
    t3 = t.reshape(G, H, Wo)

    # Row pool: one batched dot_general over the 5B slabs.  rmat is broadcast once per
    # grid step (bf16; negligible next to the matmul FLOPs) and reused by all 3 passes.
    rb = jnp.broadcast_to(rmat, (G, Ho, H))
    u = _split3_dot(
        t3, lambda a: jnp.einsum('goh,gha->goa', rb, a,
                                 preferred_element_type=jnp.float32))  # (5B, Ho, Wo)

    inv = 1.0 / float(patch_size * patch_size)   # combined 1/P^2, applied once
    mu_x = u[0 * B:1 * B] * inv
    mu_y = u[1 * B:2 * B] * inv
    sigma_x = u[2 * B:3 * B] * inv - mu_x * mu_x
    sigma_y = u[3 * B:4 * B] * inv - mu_y * mu_y
    sigma_xy = u[4 * B:5 * B] * inv - mu_x * mu_y

    ssim_n = (2.0 * mu_x * mu_y + C1) * (2.0 * sigma_xy + C2)
    ssim_d = (mu_x * mu_x + mu_y * mu_y + C1) * (sigma_x + sigma_y + C2)
    out = jnp.clip((1.0 - ssim_n / ssim_d) * 0.5, 0.0, 1.0)
    # Full-block store; lane-dense for realistic image widths (Wo >= 128).
    o_ref[...] = out.astype(o_ref.dtype)


def _vmem_capacity_bytes():
    try:
        return int(getattr(pltpu.get_tpu_info(), "vmem_capacity_bytes"))
    except Exception:
        return 64 << 20          # conservative fallback: v7x-sized VMEM


def _choose_block_channels(nc, h, w, target_bytes):
    """Channels per grid step: largest divisor of nc fitting the VMEM target, preferring
    an EVEN grid-step count (v7x's 2 TensorCores split a 'parallel' grid)."""
    # Rough per-channel f32 working set: double-buffered inputs/outputs, the fused
    # 5-statistic stack + split residuals, pooled slabs, and the broadcast row matrix.
    per_channel = max(1, h * w * 4 * 28)
    b_cap = int(max(1, min(nc, target_bytes // per_channel)))
    fitting = [d for d in range(1, nc + 1) if nc % d == 0 and d <= b_cap] or [1]
    even_steps = [d for d in fitting if (nc // d) % 2 == 0]
    return max(even_steps) if even_steps else max(fitting)


def ssim_pallas(x, y, patch_size, *, block_channels=None):
    """x, y: (N, C, H, W). Returns (N, C, Ho, Wo) like the torch module."""
    N, C, H, W = x.shape
    pad = patch_size // 2
    Ho = H + 2 * pad - patch_size + 1
    Wo = W + 2 * pad - patch_size + 1
    NC = N * C

    # Fused reflect-pad + window-SUM band matrices; integer-valued -> exact in bf16.
    rmat = jnp.asarray(_pool_reflect_matrix(H, patch_size), dtype=jnp.bfloat16)      # (Ho, H)
    cmat = jnp.asarray(_pool_reflect_matrix(W, patch_size).T, dtype=jnp.bfloat16)    # (W, Wo)

    xf = x.reshape(NC, H, W)
    yf = y.reshape(NC, H, W)

    # Generation-aware VMEM budget: ~96 MiB on 128-MiB parts (v5e/v6e), ~48 MiB on v7x.
    vmem_cap = _vmem_capacity_bytes()
    vmem_limit = int(min(96 << 20, (vmem_cap * 3) // 4))

    if block_channels is None:
        B = _choose_block_channels(NC, H, W, target_bytes=vmem_limit // 2)
    else:
        B = block_channels
    assert NC % B == 0

    kernel = functools.partial(_ssim_kernel, patch_size=patch_size)

    out = pl.pallas_call(
        kernel,
        out_shape=jax.ShapeDtypeStruct((NC, Ho, Wo), x.dtype),
        grid_spec=pltpu.PrefetchScalarGridSpec(
            num_scalar_prefetch=0,
            grid=(NC // B,),
            in_specs=[
                pl.BlockSpec((B, H, W), lambda i: (i, 0, 0)),
                pl.BlockSpec((B, H, W), lambda i: (i, 0, 0)),
                # Pooling matrices: constant block index -> fetched once, stay resident
                # (bf16 halves their footprint vs the previous f32 matrices).
                pl.BlockSpec((Ho, H), lambda i: (0, 0)),
                pl.BlockSpec((W, Wo), lambda i: (0, 0)),
            ],
            out_specs=pl.BlockSpec((B, Ho, Wo), lambda i: (i, 0, 0)),
        ),
        compiler_params=pltpu.CompilerParams(
            dimension_semantics=("parallel",),
            vmem_limit_bytes=vmem_limit,
        ),
    )(xf, yf, rmat, cmat)
    return out.reshape(N, C, Ho, Wo)


def ssim_reference(x, y, patch_size):
    """Pure-JAX reference mirroring the PyTorch module, for validation."""
    pad = patch_size // 2
    xp = jnp.pad(x, ((0, 0), (0, 0), (pad, pad), (pad, pad)), mode="reflect")
    yp = jnp.pad(y, ((0, 0), (0, 0), (pad, pad), (pad, pad)), mode="reflect")

    def avg_pool(a):
        Hp, Wp = a.shape[-2], a.shape[-1]
        Ho, Wo = Hp - patch_size + 1, Wp - patch_size + 1
        s = jnp.zeros(a.shape[:-2] + (Ho, Wo), a.dtype)
        for di in range(patch_size):
            for dj in range(patch_size):
                s = s + a[..., di:di + Ho, dj:dj + Wo]
        return s / (patch_size * patch_size)

    mu_x = avg_pool(xp)
    mu_y = avg_pool(yp)
    sigma_x = avg_pool(xp * xp) - mu_x ** 2
    sigma_y = avg_pool(yp * yp) - mu_y ** 2
    sigma_xy = avg_pool(xp * yp) - mu_x * mu_y
    n = (2 * mu_x * mu_y + C1) * (2 * sigma_xy + C2)
    d = (mu_x ** 2 + mu_y ** 2 + C1) * (sigma_x + sigma_y + C2)
    return jnp.clip((1 - n / d) / 2, 0.0, 1.0)


if __name__ == "__main__":
    # SSIM has no learnable parameters; only patch_size from __init__.
    patch_size = 3
    N, C, H, W = 2, 4, 16, 16

    key = jax.random.PRNGKey(0)
    kx, ky = jax.random.split(key)
    x = jax.random.uniform(kx, (N, C, H, W), dtype=jnp.float32)
    y = jax.random.uniform(ky, (N, C, H, W), dtype=jnp.float32)

    out = ssim_pallas(x, y, patch_size)
    out = jax.block_until_ready(out)

    ref = ssim_reference(x, y, patch_size)
    assert out.shape == ref.shape
    assert jnp.allclose(out, ref, atol=1e-5, rtol=1e-5)

    print("KERNEL_OK")
</pallas_src>

<mosaic_0001>
module attributes {stable_mosaic.version = 11 : i64} {
  func.func @_ssim_kernel(%arg0: i32, %arg1: memref<4x16x16xf32, #tpu.memory_space<vmem>>, %arg2: memref<4x16x16xf32, #tpu.memory_space<vmem>>, %arg3: memref<16x16xbf16, #tpu.memory_space<vmem>>, %arg4: memref<16x16xbf16, #tpu.memory_space<vmem>>, %arg5: memref<4x16x16xf32, #tpu.memory_space<vmem>>) attributes {dimension_semantics = [#tpu.dimension_semantics<parallel>], iteration_bounds = array<i64: 2>, scalar_prefetch = 0 : i64, scratch_operands = 0 : i64, tpu.core_type = #tpu.core_type<tc>, window_params = [{transform_indices = @transform_0, window_bounds = array<i64: 4, 16, 16>}, {transform_indices = @transform_1, window_bounds = array<i64: 4, 16, 16>}, {pipeline_mode = #tpu.pipeline_mode<synchronous>, transform_indices = @transform_2, window_bounds = array<i64: 16, 16>}, {pipeline_mode = #tpu.pipeline_mode<synchronous>, transform_indices = @transform_3, window_bounds = array<i64: 16, 16>}, {transform_indices = @transform_4, window_bounds = array<i64: 4, 16, 16>}]} {
    %c0 = arith.constant 0 : index
    %c0_0 = arith.constant 0 : index
    %c0_1 = arith.constant 0 : index
    %0 = vector.load %arg1[%c0, %c0_0, %c0_1] : memref<4x16x16xf32, #tpu.memory_space<vmem>>, vector<4x16x16xf32>
    %c0_2 = arith.constant 0 : index
    %c0_3 = arith.constant 0 : index
    %c0_4 = arith.constant 0 : index
    %1 = vector.load %arg2[%c0_2, %c0_3, %c0_4] : memref<4x16x16xf32, #tpu.memory_space<vmem>>, vector<4x16x16xf32>
    %c0_5 = arith.constant 0 : index
    %c0_6 = arith.constant 0 : index
    %2 = vector.load %arg3[%c0_5, %c0_6] : memref<16x16xbf16, #tpu.memory_space<vmem>>, vector<16x16xbf16>
    %c0_7 = arith.constant 0 : index
    %c0_8 = arith.constant 0 : index
    %3 = vector.load %arg4[%c0_7, %c0_8] : memref<16x16xbf16, #tpu.memory_space<vmem>>, vector<16x16xbf16>
    %4 = arith.mulf %0, %0 : vector<4x16x16xf32>
    %5 = arith.mulf %1, %1 : vector<4x16x16xf32>
    %6 = arith.mulf %0, %1 : vector<4x16x16xf32>
    %7 = tpu.concatenate %0, %1, %4, %5, %6 in 0 : vector<4x16x16xf32>, vector<4x16x16xf32>, vector<4x16x16xf32>, vector<4x16x16xf32>, vector<4x16x16xf32> -> vector<20x16x16xf32>
    %8 = vector.shape_cast %7 : vector<20x16x16xf32> to vector<320x16xf32>
    %9 = arith.truncf %8 : vector<320x16xf32> to vector<320x16xbf16>
    %cst = arith.constant dense<0.000000e+00> : vector<320x16xf32>
    %10 = tpu.matmul %9, %3, %cst {dimension_numbers = #tpu.dot_dimension_numbers<[1], [0], [0], [1], [0, 0, 1, 1], [], []>} : vector<320x16xbf16>, vector<16x16xbf16>, vector<320x16xf32> -> vector<320x16xf32>
    %11 = arith.extf %9 : vector<320x16xbf16> to vector<320x16xf32>
    %12 = arith.subf %8, %11 : vector<320x16xf32>
    %13 = arith.truncf %12 : vector<320x16xf32> to vector<320x16xbf16>
    %cst_9 = arith.constant dense<0.000000e+00> : vector<320x16xf32>
    %14 = tpu.matmul %13, %3, %cst_9 {dimension_numbers = #tpu.dot_dimension_numbers<[1], [0], [0], [1], [0, 0, 1, 1], [], []>} : vector<320x16xbf16>, vector<16x16xbf16>, vector<320x16xf32> -> vector<320x16xf32>
    %15 = arith.addf %10, %14 : vector<320x16xf32>
    %16 = arith.extf %13 : vector<320x16xbf16> to vector<320x16xf32>
    %17 = arith.subf %12, %16 : vector<320x16xf32>
    %18 = arith.truncf %17 : vector<320x16xf32> to vector<320x16xbf16>
    %cst_10 = arith.constant dense<0.000000e+00> : vector<320x16xf32>
    %19 = tpu.matmul %18, %3, %cst_10 {dimension_numbers = #tpu.dot_dimension_numbers<[1], [0], [0], [1], [0, 0, 1, 1], [], []>} : vector<320x16xbf16>, vector<16x16xbf16>, vector<320x16xf32> -> vector<320x16xf32>
    %20 = arith.addf %15, %19 : vector<320x16xf32>
    %21 = vector.shape_cast %20 : vector<320x16xf32> to vector<20x16x16xf32>
    %22 = vector.shape_cast %2 : vector<16x16xbf16> to vector<1x16x16xbf16>
    %23 = vector.broadcast %22 : vector<1x16x16xbf16> to vector<20x16x16xbf16>
    %24 = arith.truncf %21 : vector<20x16x16xf32> to vector<20x16x16xbf16>
    "tpu.trace_start"() <{level = 10 : i32, message = "goh,gha->goa"}> : () -> ()
    %cst_11 = arith.constant dense<0.000000e+00> : vector<20x16x16xf32>
    %25 = tpu.matmul %23, %24, %cst_11 {dimension_numbers = #tpu.dot_dimension_numbers<[2], [1], [1], [2], [0, 0, 0, 1, 1, 2], [0], [0]>} : vector<20x16x16xbf16>, vector<20x16x16xbf16>, vector<20x16x16xf32> -> vector<20x16x16xf32>
    "tpu.trace_stop"() : () -> ()
    %26 = arith.extf %24 : vector<20x16x16xbf16> to vector<20x16x16xf32>
    %27 = arith.subf %21, %26 : vector<20x16x16xf32>
    %28 = arith.truncf %27 : vector<20x16x16xf32> to vector<20x16x16xbf16>
    "tpu.trace_start"() <{level = 10 : i32, message = "goh,gha->goa"}> : () -> ()
    %cst_12 = arith.constant dense<0.000000e+00> : vector<20x16x16xf32>
    %29 = tpu.matmul %23, %28, %cst_12 {dimension_numbers = #tpu.dot_dimension_numbers<[2], [1], [1], [2], [0, 0, 0, 1, 1, 2], [0], [0]>} : vector<20x16x16xbf16>, vector<20x16x16xbf16>, vector<20x16x16xf32> -> vector<20x16x16xf32>
    "tpu.trace_stop"() : () -> ()
    %30 = arith.addf %25, %29 : vector<20x16x16xf32>
    %31 = arith.extf %28 : vector<20x16x16xbf16> to vector<20x16x16xf32>
    %32 = arith.subf %27, %31 : vector<20x16x16xf32>
    %33 = arith.truncf %32 : vector<20x16x16xf32> to vector<20x16x16xbf16>
    "tpu.trace_start"() <{level = 10 : i32, message = "goh,gha->goa"}> : () -> ()
    %cst_13 = arith.constant dense<0.000000e+00> : vector<20x16x16xf32>
    %34 = tpu.matmul %23, %33, %cst_13 {dimension_numbers = #tpu.dot_dimension_numbers<[2], [1], [1], [2], [0, 0, 0, 1, 1, 2], [0], [0]>} : vector<20x16x16xbf16>, vector<20x16x16xbf16>, vector<20x16x16xf32> -> vector<20x16x16xf32>
    "tpu.trace_stop"() : () -> ()
    %35 = arith.addf %30, %34 : vector<20x16x16xf32>
    %36 = vector.extract_strided_slice %35 {offsets = [0, 0, 0], sizes = [4, 16, 16], strides = [1, 1, 1]} : vector<20x16x16xf32> to vector<4x16x16xf32>
    %cst_14 = arith.constant 0.111111112 : f32
    %37 = vector.broadcast %cst_14 : f32 to vector<4x16x16xf32>
    %38 = arith.mulf %36, %37 : vector<4x16x16xf32>
    %39 = vector.extract_strided_slice %35 {offsets = [4, 0, 0], sizes = [4, 16, 16], strides = [1, 1, 1]} : vector<20x16x16xf32> to vector<4x16x16xf32>
    %cst_15 = arith.constant 0.111111112 : f32
    %40 = vector.broadcast %cst_15 : f32 to vector<4x16x16xf32>
    %41 = arith.mulf %39, %40 : vector<4x16x16xf32>
    %42 = vector.extract_strided_slice %35 {offsets = [8, 0, 0], sizes = [4, 16, 16], strides = [1, 1, 1]} : vector<20x16x16xf32> to vector<4x16x16xf32>
    %cst_16 = arith.constant 0.111111112 : f32
    %43 = vector.broadcast %cst_16 : f32 to vector<4x16x16xf32>
    %44 = arith.mulf %42, %43 : vector<4x16x16xf32>
    %45 = arith.mulf %38, %38 : vector<4x16x16xf32>
    %46 = arith.subf %44, %45 : vector<4x16x16xf32>
    %47 = vector.extract_strided_slice %35 {offsets = [12, 0, 0], sizes = [4, 16, 16], strides = [1, 1, 1]} : vector<20x16x16xf32> to vector<4x16x16xf32>
    %cst_17 = arith.constant 0.111111112 : f32
    %48 = vector.broadcast %cst_17 : f32 to vector<4x16x16xf32>
    %49 = arith.mulf %47, %48 : vector<4x16x16xf32>
    %50 = arith.mulf %41, %41 : vector<4x16x16xf32>
    %51 = arith.subf %49, %50 : vector<4x16x16xf32>
    %52 = vector.extract_strided_slice %35 {offsets = [16, 0, 0], sizes = [4, 16, 16], strides = [1, 1, 1]} : vector<20x16x16xf32> to vector<4x16x16xf32>
    %cst_18 = arith.constant 0.111111112 : f32
    %53 = vector.broadcast %cst_18 : f32 to vector<4x16x16xf32>
    %54 = arith.mulf %52, %53 : vector<4x16x16xf32>
    %55 = arith.mulf %38, %41 : vector<4x16x16xf32>
    %56 = arith.subf %54, %55 : vector<4x16x16xf32>
    %cst_19 = arith.constant 2.000000e+00 : f32
    %57 = vector.broadcast %cst_19 : f32 to vector<4x16x16xf32>
    %58 = arith.mulf %57, %38 : vector<4x16x16xf32>
    %59 = arith.mulf %58, %41 : vector<4x16x16xf32>
    %cst_20 = arith.constant 9.99999974E-5 : f32
    %60 = vector.broadcast %cst_20 : f32 to vector<4x16x16xf32>
    %61 = arith.addf %59, %60 : vector<4x16x16xf32>
    %cst_21 = arith.constant 2.000000e+00 : f32
    %62 = vector.broadcast %cst_21 : f32 to vector<4x16x16xf32>
    %63 = arith.mulf %62, %56 : vector<4x16x16xf32>
    %cst_22 = arith.constant 8.99999984E-4 : f32
    %64 = vector.broadcast %cst_22 : f32 to vector<4x16x16xf32>
    %65 = arith.addf %63, %64 : vector<4x16x16xf32>
    %66 = arith.mulf %61, %65 : vector<4x16x16xf32>
    %67 = arith.mulf %38, %38 : vector<4x16x16xf32>
    %68 = arith.mulf %41, %41 : vector<4x16x16xf32>
    %69 = arith.addf %67, %68 : vector<4x16x16xf32>
    %cst_23 = arith.constant 9.99999974E-5 : f32
    %70 = vector.broadcast %cst_23 : f32 to vector<4x16x16xf32>
    %71 = arith.addf %69, %70 : vector<4x16x16xf32>
    %72 = arith.addf %46, %51 : vector<4x16x16xf32>
    %cst_24 = arith.constant 8.99999984E-4 : f32
    %73 = vector.broadcast %cst_24 : f32 to vector<4x16x16xf32>
    %74 = arith.addf %72, %73 : vector<4x16x16xf32>
    %75 = arith.mulf %71, %74 : vector<4x16x16xf32>
    %76 = arith.divf %66, %75 : vector<4x16x16xf32>
    %cst_25 = arith.constant 1.000000e+00 : f32
    %77 = vector.broadcast %cst_25 : f32 to vector<4x16x16xf32>
    %78 = arith.subf %77, %76 : vector<4x16x16xf32>
    %cst_26 = arith.constant 5.000000e-01 : f32
    %79 = vector.broadcast %cst_26 : f32 to vector<4x16x16xf32>
    %80 = arith.mulf %78, %79 : vector<4x16x16xf32>
    %cst_27 = arith.constant 0.000000e+00 : f32
    %cst_28 = arith.constant 1.000000e+00 : f32
    %81 = vector.broadcast %cst_27 : f32 to vector<4x16x16xf32>
    %82 = arith.maximumf %81, %80 : vector<4x16x16xf32>
    %83 = vector.broadcast %cst_28 : f32 to vector<4x16x16xf32>
    %84 = arith.minimumf %83, %82 : vector<4x16x16xf32>
    %c0_29 = arith.constant 0 : index
    %c0_30 = arith.constant 0 : index
    %c0_31 = arith.constant 0 : index
    %85 = vector.load %arg5[%c0_29, %c0_30, %c0_31] : memref<4x16x16xf32, #tpu.memory_space<vmem>>, vector<4x16x16xf32>
    tpu.vector_store %arg5[%c0_29, %c0_30, %c0_31], %84 {strides = array<i32>} : memref<4x16x16xf32, #tpu.memory_space<vmem>>, vector<4x16x16xf32>,
    return
  }
  func.func @transform_0(%arg0: i32) -> (i32, i32, i32) {
    %c0_i32 = arith.constant 0 : i32
    %c0_i32_0 = arith.constant 0 : i32
    %c0_i32_1 = arith.constant 0 : i32
    return %arg0, %c0_i32, %c0_i32_0 : i32, i32, i32
  }
  func.func @transform_1(%arg0: i32) -> (i32, i32, i32) {
    %c0_i32 = arith.constant 0 : i32
    %c0_i32_0 = arith.constant 0 : i32
    %c0_i32_1 = arith.constant 0 : i32
    return %arg0, %c0_i32, %c0_i32_0 : i32, i32, i32
  }
  func.func @transform_2(%arg0: i32) -> (i32, i32) {
    %c0_i32 = arith.constant 0 : i32
    %c0_i32_0 = arith.constant 0 : i32
    %c0_i32_1 = arith.constant 0 : i32
    return %c0_i32, %c0_i32_0 : i32, i32
  }
  func.func @transform_3(%arg0: i32) -> (i32, i32) {
    %c0_i32 = arith.constant 0 : i32
    %c0_i32_0 = arith.constant 0 : i32
    %c0_i32_1 = arith.constant 0 : i32
    return %c0_i32, %c0_i32_0 : i32, i32
  }
  func.func @transform_4(%arg0: i32) -> (i32, i32, i32) {
    %c0_i32 = arith.constant 0 : i32
    %c0_i32_0 = arith.constant 0 : i32
    %c0_i32_1 = arith.constant 0 : i32
    return %arg0, %c0_i32, %c0_i32_0 : i32, i32, i32
  }
}

</mosaic_0001>

<bundles_post_ra>
// kernel: tpu_custom_call.1
= control target key start
LH: loop header
LB: loop body
LE: loop exit
PB: predicated region body
PF: predicated region fallthrough
CT: control target
= control target key end

     0   :  { %s7538_s0 = inlined_call_operand.hbm [shape: f32[8,16,16], index: 0, kind: input, shape index: {}]   ;;  %s7539_s1 = inlined_call_operand.hbm [shape: f32[8,16,16], index: 1, kind: input, shape index: {}]   ;;  %s7540_s2 = inlined_call_operand.hbm [shape: bf16[16,16], index: 2, kind: input, shape index: {}]   ;;  %s7541_s3 = inlined_call_operand.vmem [shape: bf16[16,16], index: 3, kind: input, shape index: {}]   ;;  %s7542_s4 = inlined_call_operand.hbm [shape: f32[8,16,16], index: 4, kind: output, shape index: {}]  }
   0x1   :  { %7587 = sst [smem:[#allocation34_spill]] %s7538_s0 }
   0x2   :  { %9 = vsyncpa [#allocation3], 0 }
   0x3   :  { %11 = vsyncpa [#allocation3 + $0x1], 0 }
   0x4   :  { %12 = vsyncpa [#allocation6], 0 }
   0x5   :  { %14 = vsyncpa [#allocation6 + $0x1], 0 }
   0x6   :  { %15 = vsyncpa [#allocation4], 0 }
   0x7   :  { %17 = vsyncpa [#allocation4 + $0x1], 0  ;;  %s5746_s15 = smov 0   ;;  %s5748_s16 = smov 0  }
   0x8   :  { %s5750_s17 = smov 0   ;;  %s5752_s18 = smov 0  }
   0x9 LB: > { %s5767_s19 = sadd.s32 4294967295, %s5707_s18   ;;  %s4426_s20 = sadd.s32 4294967294, %s5707_s18   ;;  %s5707_s18 = sphi %s5752_s18, %s7720_s18   ;;  %s5703_s17 = sphi %s5750_s17, %s7719_s17   ;;  %s5699_s16 = sphi %s5748_s16, %s7718_s16   ;;  %s5695_s15 = sphi %s5746_s15, %s7717_s15  }
   0xa   : > { %p43_p0 = scmp.ne.s32.totalorder %s5699_s16, %s5695_s15  ;;  %p7543_p1 = scmp.eq.s32.totalorder %s5767_s19, 0 }
   0xb   : > { %p141_p3 = scmp.eq.s32.totalorder %s4426_s20, 1  ;;  %p4427_p5 = scmp.ge.s32.totalorder %s5707_s18, 1 }
   0xc   : > { %p5776_p4 = por %p7543_p1, %p43_p0  ;;  %p148_p7 = scmp.lt.s32.totalorder %s5707_s18, 3 }
   0xd   : > { %p5781_p6 = por %p141_p3, %p43_p0  ;;  %s5709_s24 = smov [#allocation7]  }
   0xe   : > { %s7588_s21 = scalar_select %p5776_p4, 1, 0 }
   0xf   : > { %s7589_s22 = scalar_select %p5781_p6, 1, 0 }
  0x10   : > { %p5786_p8 = pnand %p4427_p5, %p148_p7  ;;  %s160_s25 = sshll.u32 %s5709_s24, 4  ;;  %s5790_s25 = int_to_ptr.vmem [resolvable:$true] %s160_s25 }
  0x11   : > { %s5802_s27 = sadd.s32 1, %s5707_s18   ;;  %s30_s28 = sadd.s32 1, %s5703_s17 }
  0x12   : > { %s7590_s23 = scalar_select %p5786_p8, 1, 0 }
  0x13   : > { %p5466_p9 = pneg %p5786_p8  ;;  %s27_s29 = ssub.s32 %s5707_s18, %s5802_s27 }
  0x14   : > { %s5545_s6 = scalar_lea.hbm %s7540_s2, 128 }
  0x15   : > { %p5797_p11 = pnand %p5466_p9, %p7543_p1  ;;  %p5546_p12 = scmp.ne.s32.totalorder %s7540_s2, %s5545_s6 }
  0x16   : > { %p5552_p5 = scmp.lt.u32.totalorder %s5545_s6, %s7540_s2 }
  0x17   : > { %p5547_p13 = pneg %p5797_p11 }
  0x19   : > { %p5548_p0 = pnand %p5547_p13, %p5546_p12 }
  0x1b   : > { %p5549_p3 = pneg %p5548_p0 }
  0x1d   : > { %p5554_p7 = pnand %p5552_p5, %p5549_p3 }
  0x1f   : > { %5557 = shalt.err (!%p5554_p7)
}
  0x20   : > { %s5558_s11 = scalar_lea.vmem %s5790_s25, 128  ;;  %p5566_p2 = scmp.lt.s32.totalorder %s5790_s25, %s5790_s25 }
  0x21   : > { %p5559_p9 = scmp.ne.s32.totalorder %s5790_s25, %s5558_s11  ;;  %p5567_p6 = scmp.lt.s32.totalorder %s5558_s11, %s5558_s11 }
  0x23   : > { %p5561_p10 = pnand %p5559_p9, %p5547_p13  ;;  %p5568_p4 = por %p5567_p6, %p5566_p2 }
  0x25   : > { %p5562_p1 = pneg %p5561_p10 }
  0x27   : > { %p5569_p8 = pnand %p5568_p4, %p5562_p1 }
  0x29   : > { %5572 = shalt.err (!%p5569_p8)
}
  0x2a   : > { %s5710_s12 = smov 64   ;;  %s5711_s13 = smov 4  }
  0x2b   : > { %5469 = dma.hbm_to_vmem [thread:$0]  (!%p5797_p11), %s7540_s2, 128, %s5790_s25, [#allocation6], %s5710_s12, %s5710_s12, %s5711_s13  }
  0x2c   : > { %p28_p1 = scmp.eq.s32.totalorder %s27_s29, 0  ;;  %p37_p2 = scmp.ne.s32.totalorder %s5703_s17, %s5699_s16 }
  0x2d   : > { %p38_p4 = scmp.eq.s32.totalorder %s5707_s18, 0  ;;  %p5482_p6 = scmp.lt.s32.totalorder %s5707_s18, 2 }
  0x2e   : > { %s5833_s24 = scalar_select %p28_p1, %s5703_s17, %s30_s28  }
  0x2f   : > { %p39_p8 = por %p38_p4, %p37_p2  ;;  %p7592_p10 = scmp.eq.s32.totalorder %s5767_s19, 1 }
  0x30   : > { %s177_s5 = sand.u32 1, %s5703_s17   ;;  %s4572_s6 = sshll.u32 %s5707_s18, 10 }
  0x31   : > { %p5837_p12 = por %p7592_p10, %p37_p2  ;;  %s5843_s7 = sshll.u32 %s177_s5, 6 }
  0x32   : > { %s7594_s0 = sld [smem:[#allocation34_spill]]  ;;  %s181_s28 = scalar_lea.vmem [#allocation2], %s5843_s7 }
  0x33   : > { %s189_s29 = sshll.u32 %s181_s28, 4  ;;  %p5853_p11 = pnand %p5482_p6, %p39_p8  ;;  %s5857_s29 = int_to_ptr.vmem [resolvable:$true] %s189_s29 }
  0x34   : > { %s5859_s10 = scalar_lea.sflag [#allocation3], %s177_s5 }
  0x35   : > { %p5575_p0 = pneg %p5853_p11 }
  0x38   : > { %s5850_s25 = scalar_lea.hbm %s7594_s0, %s4572_s6  ;;  %s5578_s14 = scalar_lea.hbm %s7594_s0, 2048 }
  0x39   : > { %s5573_s11 = scalar_lea.hbm %s5850_s25, 1024  ;;  %p5579_p7 = scmp.lt.u32.totalorder %s5850_s25, %s7594_s0 }
  0x3a   : > { %p5574_p13 = scmp.ne.s32.totalorder %s5850_s25, %s5573_s11  ;;  %p5580_p9 = scmp.lt.u32.totalorder %s5578_s14, %s5573_s11 }
  0x3b   : > { %p5582_p2 = scmp.lt.u32.totalorder %s5573_s11, %s5850_s25 }
  0x3c   : > { %p5576_p3 = pnand %p5575_p0, %p5574_p13  ;;  %p5581_p1 = por %p5580_p9, %p5579_p7 }
  0x3e   : > { %p5577_p5 = pneg %p5576_p3  ;;  %p5583_p4 = por %p5582_p2, %p5581_p1 }
  0x40   : > { %p5584_p6 = pnand %p5583_p4, %p5577_p5 }
  0x42   : > { %5587 = shalt.err (!%p5584_p6)
}
  0x43   : > { %s5588_s5 = scalar_lea.vmem %s5857_s29, 1024  ;;  %s5712_s8 = smov [#allocation2]  }
  0x44   : > { %p5589_p8 = scmp.ne.s32.totalorder %s5857_s29, %s5588_s5  ;;  %s5593_s28 = sshll.u32 %s5712_s8, 4  ;;  %s5594_s28 = int_to_ptr.vmem [resolvable:$false] %s5593_s28 }
  0x45   : > { %s5595_s12 = scalar_lea.vmem %s5594_s28, 2048  ;;  %p5596_p3 = scmp.lt.s32.totalorder %s5857_s29, %s5594_s28 }
  0x46   : > { %p5591_p10 = pnand %p5589_p8, %p5575_p0  ;;  %p5597_p7 = scmp.lt.s32.totalorder %s5595_s12, %s5588_s5 }
  0x48   : > { %p5592_p13 = pneg %p5591_p10  ;;  %p5598_p9 = por %p5597_p7, %p5596_p3 }
  0x4a   : > { %p5599_p1 = pnand %p5598_p9, %p5592_p13 }
  0x4c   : > { %5602 = shalt.err (!%p5599_p1)
}
  0x4d   : > { %s5713_s11 = smov 128   ;;  %s5714_s13 = smov 8  }
  0x4e   : > { %5473 = dma.hbm_to_vmem [thread:$0]  (!%p5853_p11), %s5850_s25, 1024, %s5857_s29, %s5859_s10, %s5713_s11, %s5713_s11, %s5714_s13  }
  0x4f   : > { %s5895_s26 = scalar_lea.hbm %s7539_s1, %s4572_s6  ;;  %s203_s5 = scalar_lea.vmem [#allocation5], %s5843_s7 }
  0x50   : > { %s211_s8 = sshll.u32 %s203_s5, 4  ;;  %s199_s28 = sand.u32 1, %s5707_s18   ;;  %s5899_s8 = int_to_ptr.vmem [resolvable:$true] %s211_s8 }
  0x51   : > { %s5901_s12 = scalar_lea.sflag [#allocation6], %s199_s28  ;;  %s5603_s0 = scalar_lea.hbm %s5895_s26, 1024 }
  0x52   : > { %p5604_p5 = scmp.ne.s32.totalorder %s5895_s26, %s5603_s0  ;;  %s5608_s29 = scalar_lea.hbm %s7539_s1, 2048 }
  0x53   : > { %p5609_p6 = scmp.lt.u32.totalorder %s5895_s26, %s7539_s1  ;;  %p5610_p8 = scmp.lt.u32.totalorder %s5608_s29, %s5603_s0 }
  0x54   : > { %p5606_p2 = pnand %p5604_p5, %p5575_p0  ;;  %p5612_p13 = scmp.lt.u32.totalorder %s5603_s0, %s5895_s26 }
  0x55   : > { %p5611_p10 = por %p5610_p8, %p5609_p6 }
  0x56   : > { %p5607_p4 = pneg %p5606_p2 }
  0x57   : > { %p5613_p3 = por %p5612_p13, %p5611_p10 }
  0x59   : > { %p5614_p7 = pnand %p5613_p3, %p5607_p4 }
  0x5b   : > { %5617 = shalt.err (!%p5614_p7)
}
  0x5c   : > { %s5618_s7 = scalar_lea.vmem %s5899_s8, 1024  ;;  %s5715_s20 = smov [#allocation5]  }
  0x5d   : > { %p5619_p9 = scmp.ne.s32.totalorder %s5899_s8, %s5618_s7  ;;  %s5623_s5 = sshll.u32 %s5715_s20, 4  ;;  %s5624_s5 = int_to_ptr.vmem [resolvable:$false] %s5623_s5 }
  0x5e   : > { %s5625_s28 = scalar_lea.vmem %s5624_s5, 2048  ;;  %p5626_p2 = scmp.lt.s32.totalorder %s5899_s8, %s5624_s5 }
  0x5f   : > { %p5621_p1 = pnand %p5619_p9, %p5575_p0  ;;  %p5627_p6 = scmp.lt.s32.totalorder %s5625_s28, %s5618_s7 }
  0x61   : > { %p5622_p5 = pneg %p5621_p1  ;;  %p5628_p8 = por %p5627_p6, %p5626_p2 }
  0x63   : > { %p5629_p10 = pnand %p5628_p8, %p5622_p5 }
  0x65   : > { %5632 = shalt.err (!%p5629_p10)
}
  0x66   : > { %5476 = dma.hbm_to_vmem [thread:$0]  (!%p5853_p11), %s5895_s26, 1024, %s5899_s8, %s5901_s12, %s5713_s11, %s5713_s11, %s5714_s13  }
  0x67   : > { %p7596_p0 = scmp.ne.s32.totalorder %s7590_s23, 0 }
  0x69   : > { %223 = sbr.rel (%p7596_p0) target bundleno = 1176 (0x498), region = 36 }
  0x70   : > { %s5933_s0 = sand.u32 1, %s5699_s16   ;;  %p7597_p4 = scmp.ne.s32.totalorder %s7588_s21, 0 }
  0x71   : > { %s5936_s25 = sshll.u32 %s5933_s0, 6  ;;  %s226_s9 = scalar_lea.sflag [#allocation3], %s5933_s0 }
  0x72   : > { %s229_s6 = scalar_lea.vmem [#allocation2], %s5936_s25 }
  0x73   : > { %5678 = dma.done.wait (%p7597_p4), %s226_s9, 1024  }
  0x74   : > { %5680 = vsyncadd (%p7597_p4), %s226_s9, 4294966272  ;;  %s234_s23 = sand.u32 1, %s5767_s19   ;;  %s5946_s13 = scalar_lea.vmem [#allocation5], %s5936_s25 }
  0x75   : > { %s235_s11 = scalar_lea.sflag [#allocation6], %s234_s23 }
  0x76   : > { %5682 = dma.done.wait (%p7597_p4), %s235_s11, 1024  }
  0x77   : > { %5684 = vsyncadd (%p7597_p4), %s235_s11, 4294966272  ;;  %p7598_p11 = scmp.eq.s32.totalorder %s5767_s19, 0 }
  0x79   : > { %5686 = dma.done.wait (%p7598_p11), [#allocation6], 128   ;;  %p7599_p13 = pmov %p7598_p11 }
  0x7a   : > { %v5959_v0 = vld [vmem:[%s7541_s3] sm:$0xff]   ;;  %v5963_v2 = vld [vmem:[%s229_s6 + $0x8] sm:$0xff]  ;;  %v5965_v3 = vld [vmem:[%s229_s6 + $0x10] sm:$0xff]  ;;  %vm446_vm0 = vcmask 130048   ;;  %vm5717_vm1 = vmmov 0   ;;  %s7460_s21 = scalar_lea.vmem [#allocation8], %s5936_s25 }
  0x7b   : > { %5688 = vsyncadd (%p7599_p13), [#allocation6], 4294967168  ;;  %7600 = vst [vmem:[#allocation13_spill] sm:$0xff] %v5959_v0  ;;  %v5961_v1 = vld [vmem:[%s229_s6] sm:$0xff]  ;;  %4760 = vmatprep.subr.bf16.mxu0 %v5959_v0  ;;  %v5972_v5 = vld [vmem:[%s229_s6 + $0x18] sm:$0xff]  ;;  %v297_v54 = vmul.f32 %v5963_v2, %v5963_v2  ;;  %s4576_s12 = sshll.u32 %s5767_s19, 10 }
  0x7c   : > { %v5970_v4 = vpack.c.bf16 %v5963_v2, %v5961_v1  ;;  %v5974_v6 = vld [vmem:[%s229_s6 + $0x20] sm:$0xff]  ;;  %v5976_v7 = vld [vmem:[%s229_s6 + $0x28] sm:$0xff]  ;;  %4761 = vmatpush3.bf16.msra.mxu0 %v5959_v0  ;;  %v5981_v8 = vpack.c.bf16 %v5972_v5, %v5965_v3  ;;  %v5987_v10 = vld [vmem:[%s229_s6 + $0x30] sm:$0xff]  ;;  %v296_v53 = vmul.f32 %v5961_v1, %v5961_v1  ;;  %s4321_s29 = sshll.u32 %s7460_s21, 4  ;;  %s7488_s7 = scalar_lea.hbm %s7542_s4, %s4576_s12  ;;  %s7490_s29 = int_to_ptr.vmem [resolvable:$true] %s4321_s29 }
  0x7d   : > { %v5985_v9 = vpack.c.bf16 %v5976_v7, %v5974_v6  ;;  %v5989_v11 = vld [vmem:[%s229_s6 + $0x38] sm:$0xff]  ;;  %4802 = vmatprep.subr.bf16.mxu0 %v5959_v0  ;;  %v6003_v19 = vld [vmem:[%s5946_s13] sm:$0xff]  ;;  %v6006_v20 = vld [vmem:[%s5946_s13 + $0x8] sm:$0xff]  ;;  %s4307_s20 = scalar_lea.sflag [#allocation4], %s5933_s0  ;;  %s5633_s19 = scalar_lea.vmem %s7490_s29, 1024 }
  0x7e   : > { %7601 = vst [vmem:[#allocation14_spill] sm:$0xff] %v5970_v4  ;;  %7602 = vst [vmem:[#allocation15_spill] sm:$0xff] %v5981_v8  ;;  %v340_v12 = vunpack.c.l.bf16 %v5970_v4  ;;  %v341_v13 = vunpack.c.h.bf16 %v5970_v4  ;;  %v5996_v14 = vpack.c.bf16 %v5989_v11, %v5987_v10  ;;  %v342_v15 = vunpack.c.l.bf16 %v5981_v8  ;;  %v6021_v29 = vld [vmem:[%s5946_s13 + $0x10] sm:$0xff]  ;;  %v6024_v30 = vld [vmem:[%s5946_s13 + $0x18] sm:$0xff]  ;;  %p5634_p3 = scmp.ne.s32.totalorder %s7490_s29, %s5633_s19  ;;  %s5718_s5 = smov [#allocation8]  }
  0x7f   : > { %7603 = vst [vmem:[#allocation16_spill] sm:$0xff] %v5985_v9  ;;  %v343_v16 = vunpack.c.h.bf16 %v5981_v8  ;;  %v344_v17 = vunpack.c.l.bf16 %v5985_v9  ;;  %v345_v18 = vunpack.c.h.bf16 %v5985_v9  ;;  %v6028_v32 = vpack.c.bf16 %v6006_v20, %v6003_v19  ;;  %v6031_v33 = vld [vmem:[%s5946_s13 + $0x20] sm:$0xff]  ;;  %v6034_v34 = vld [vmem:[%s5946_s13 + $0x28] sm:$0xff]  ;;  %v6095_v62 = vld [vmem:[%s5946_s13 + $0x30] sm:$0xff]  ;;  %s5637_s28 = sshll.u32 %s5718_s5, 4  ;;  %s5638_s28 = int_to_ptr.vmem [resolvable:$false] %s5637_s28 }
  0x80   : > { %7604 = vst [vmem:[#allocation17_spill] sm:$0xff] %v5996_v14  ;;  %v380_v21 = vsub.f32 %v5961_v1, %v340_v12  ;;  %v381_v22 = vsub.f32 %v5963_v2, %v341_v13  ;;  %v346_v23 = vunpack.c.l.bf16 %v5996_v14  ;;  %v347_v24 = vunpack.c.h.bf16 %v5996_v14  ;;  %v6098_v63 = vld [vmem:[%s5946_s13 + $0x38] sm:$0xff]  ;;  %p5635_p7 = pnand %p5634_p3, %p5837_p12  ;;  %s5639_s25 = scalar_lea.vmem %s5638_s28, 2048 }
  0x81   : > { %v382_v25 = vsub.f32 %v5965_v3, %v342_v15  ;;  %v383_v26 = vsub.f32 %v5972_v5, %v343_v16  ;;  %v6015_v27 = vsub.f32 %v5974_v6, %v344_v17  ;;  %v6018_v28 = vsub.f32 %v5976_v7, %v345_v18  ;;  %7605 = vst [vmem:[#allocation18_spill] sm:$0xff] %v6028_v32  ;;  %p5640_p1 = scmp.lt.s32.totalorder %s7490_s29, %s5638_s28  ;;  %p5641_p5 = scmp.lt.s32.totalorder %s5639_s25, %s5633_s19 }
  0x82   : > { %v420_v31 = vpack.c.bf16 %v381_v22, %v380_v21  ;;  %v6041_v37 = vsub.f32 %v5987_v10, %v346_v23  ;;  %v6044_v38 = vsub.f32 %v5989_v11, %v347_v24  ;;  %v348_v41 = vunpack.c.l.bf16 %v6028_v32  ;;  %p5636_p9 = pneg %p5635_p7 }
  0x83   : > { %v421_v35 = vpack.c.bf16 %v383_v26, %v382_v25  ;;  %v6038_v36 = vpack.c.bf16 %v6018_v28, %v6015_v27  ;;  %v6050_v42 = vpack.c.bf16 %v6024_v30, %v6021_v29  ;;  %v349_v45 = vunpack.c.h.bf16 %v6028_v32  ;;  %p5642_p2 = por %p5641_p5, %p5640_p1 }
  0x84   : > { %4762 = vmatprep.mubr.msk.bf16.mxu0 %vm446_vm0, %v420_v31  ;;  %v953_v39 = vunpack.c.l.bf16 %v420_v31  ;;  %v954_v40 = vunpack.c.h.bf16 %v420_v31  ;;  %v6056_v46 = vpack.c.bf16 %v6034_v34, %v6031_v33  ;;  %v6066_v49 = vsub.f32 %v6003_v19, %v348_v41 }
  0x85   : > { %7606 = vst [vmem:[#allocation19_spill] sm:$0xff] %v6050_v42  ;;  %4763 = vmatmul.mubr.msk.bf16.vlgmr.msra.gmra.mrb[0].mxu0 %vm446_vm0, %v421_v35  ;;  %v955_v43 = vunpack.c.l.bf16 %v421_v35  ;;  %v956_v44 = vunpack.c.h.bf16 %v421_v35  ;;  %v6073_v52 = vsub.f32 %v6006_v20, %v349_v45  ;;  %v6084_v56 = vpack.c.bf16 %v6044_v38, %v6041_v37  ;;  %p5643_p6 = pnand %p5642_p2, %p5636_p9 }
  0x86   : > { %7607 = vst [vmem:[#allocation20_spill] sm:$0xff] %v6056_v46  ;;  %v6058_v47 = vsub.f32 %v380_v21, %v953_v39  ;;  %v6060_v48 = vsub.f32 %v381_v22, %v954_v40  ;;  %4803 = vmatpush3.bf16.msra.mxu0 %v5959_v0  ;;  %4766 = vmatprep.mubr.msk.bf16.mxu0 %vm446_vm0, %v6038_v36  ;;  %v350_v57 = vunpack.c.l.bf16 %v6050_v42  ;;  %v351_v58 = vunpack.c.h.bf16 %v6050_v42 }
  0x87   : > { %v6068_v50 = vsub.f32 %v382_v25, %v955_v43  ;;  %v6070_v51 = vsub.f32 %v383_v26, %v956_v44  ;;  %4844 = vmatprep.subr.bf16.mxu0 %v5959_v0  ;;  %v6090_v59 = vpack.c.bf16 %v6073_v52, %v6066_v49  ;;  %v352_v60 = vunpack.c.l.bf16 %v6056_v46 }
  0x88   : > { %7608 = vst [vmem:[#allocation21_spill] sm:$0xff] %v6058_v47  ;;  %7609 = vst [vmem:[#allocation22_spill] sm:$0xff] %v6060_v48  ;;  %v353_v61 = vunpack.c.h.bf16 %v6056_v46  ;;  %v6100_v12 = vpack.c.bf16 %v297_v54, %v296_v53  ;;  %v6105_v13 = vsub.f32 %v6021_v29, %v350_v57  ;;  %v6108_v15 = vsub.f32 %v6024_v30, %v351_v58 }
  0x89   : > { %7610 = vst [vmem:[#allocation23_spill] sm:$0xff] %v6068_v50  ;;  %7611 = vst [vmem:[#allocation24_spill] sm:$0xff] %v6070_v51  ;;  %v6112_v16 = vpack.c.bf16 %v6098_v63, %v6095_v62  ;;  %v6117_v17 = vsub.f32 %v6031_v33, %v352_v60  ;;  %v298_v23 = vmul.f32 %v5965_v3, %v5965_v3  ;;  %v958_v0 = vunpack.c.h.bf16 %v6038_v36 }
  0x8a   : > { %7612 = vst [vmem:[#allocation25_spill] sm:$0xff] %v6100_v12  ;;  %v6120_v18 = vsub.f32 %v6034_v34, %v353_v61  ;;  %v356_v21 = vunpack.c.l.bf16 %v6100_v12  ;;  %v357_v22 = vunpack.c.h.bf16 %v6100_v12  ;;  %v6128_v24 = vpack.c.bf16 %v6108_v15, %v6105_v13 }
  0x8b   : > { %7613 = vst [vmem:[#allocation26_spill] sm:$0xff] %v6112_v16  ;;  %v354_v25 = vunpack.c.l.bf16 %v6112_v16  ;;  %v355_v26 = vunpack.c.h.bf16 %v6112_v16  ;;  %v299_v31 = vmul.f32 %v5972_v5, %v5972_v5  ;;  %v300_v39 = vmul.f32 %v5974_v6, %v5974_v6 }
  0x8c   : > { %v6136_v35 = vpack.c.bf16 %v6120_v18, %v6117_v17  ;;  %v301_v40 = vmul.f32 %v5976_v7, %v5976_v7  ;;  %v6142_v41 = vsub.f32 %v296_v53, %v356_v21  ;;  %v6144_v43 = vsub.f32 %v297_v54, %v357_v22 }
  0x8d   : > { %4767 = vmatmul.mubr.msk.bf16.gmra.mrb[4].mxu0 %vm446_vm0, %v6084_v56  ;;  %v6149_v44 = vsub.f32 %v6095_v62, %v354_v25  ;;  %v6152_v45 = vsub.f32 %v6098_v63, %v355_v26  ;;  %v6154_v57 = vpack.c.bf16 %v299_v31, %v298_v23  ;;  %v302_v54 = vmul.f32 %v5987_v10, %v5987_v10 }
  0x8e   : > { %4770 = vmatprep.mubr.msk.bf16.mxu0 %vm446_vm0, %v6090_v59  ;;  %v6158_v58 = vpack.c.bf16 %v301_v40, %v300_v39  ;;  %v6162_v53 = vpack.c.bf16 %v6144_v43, %v6142_v41  ;;  %v303_v22 = vmul.f32 %v5989_v11, %v5989_v11  ;;  %v304_v55 = vmul.f32 %v6003_v19, %v6003_v19 }
  0x8f   : > { %7614 = vst [vmem:[#allocation27_spill] sm:$0xff] %v6154_v57  ;;  %v6168_v60 = vpack.c.bf16 %v6152_v45, %v6149_v44  ;;  %v358_v61 = vunpack.c.l.bf16 %v6154_v57  ;;  %v359_v21 = vunpack.c.h.bf16 %v6154_v57  ;;  %v305_v50 = vmul.f32 %v6006_v20, %v6006_v20 }
  0x90   : > { %7615 = vst [vmem:[#allocation28_spill] sm:$0xff] %v6158_v58  ;;  %v360_v25 = vunpack.c.l.bf16 %v6158_v58  ;;  %v361_v26 = vunpack.c.h.bf16 %v6158_v58  ;;  %v6186_v57 = vpack.c.bf16 %v303_v22, %v302_v54  ;;  %v959_v4 = vunpack.c.l.bf16 %v6084_v56 }
  0x91   : > { %v6182_v51 = vsub.f32 %v298_v23, %v358_v61  ;;  %v6184_v12 = vsub.f32 %v299_v31, %v359_v21  ;;  %v6194_v46 = vpack.c.bf16 %v305_v50, %v304_v55  ;;  %v306_v23 = vmul.f32 %v6021_v29, %v6021_v29 }
  0x92   : > { %7616 = vst [vmem:[#allocation29_spill] sm:$0xff] %v6186_v57  ;;  %v6190_v16 = vsub.f32 %v300_v39, %v360_v25  ;;  %v6192_v58 = vsub.f32 %v301_v40, %v361_v26  ;;  %v307_v31 = vmul.f32 %v6024_v30, %v6024_v30  ;;  %v308_v61 = vmul.f32 %v6031_v33, %v6031_v33 }
  0x93   : > { %7618 = vst [vmem:[#allocation31_spill] sm:$0xff] %v6194_v46  ;;  %v309_v39 = vmul.f32 %v6034_v34, %v6034_v34  ;;  %v6208_v40 = vpack.c.bf16 %v6184_v12, %v6182_v51  ;;  %v362_v21 = vunpack.c.l.bf16 %v6186_v57  ;;  %v363_v25 = vunpack.c.h.bf16 %v6186_v57 }
  0x94   : > { %7617 = vst [vmem:[#allocation30_spill] sm:$0xff] %v6192_v58  ;;  %v6214_v26 = vpack.c.bf16 %v6192_v58, %v6190_v16  ;;  %v364_v42 = vunpack.c.l.bf16 %v6194_v46  ;;  %v365_v47 = vunpack.c.h.bf16 %v6194_v46  ;;  %v6218_v48 = vpack.c.bf16 %v307_v31, %v306_v23 }
  0x95   : > { %4771 = vmatmul.mubr.msk.bf16.gmra.mrb[8].mxu0 %vm446_vm0, %v6128_v24  ;;  %v6220_v32 = vpack.c.bf16 %v309_v39, %v308_v61  ;;  %v6224_v14 = vsub.f32 %v302_v54, %v362_v21  ;;  %v6226_v9 = vsub.f32 %v303_v22, %v363_v25  ;;  %v957_v57 = vunpack.c.l.bf16 %v6038_v36 }
  0x96   : > { %4774 = vmatprep.mubr.msk.bf16.mxu0 %vm446_vm0, %v6136_v35  ;;  %v6232_v8 = vsub.f32 %v304_v55, %v364_v42  ;;  %v6234_v46 = vsub.f32 %v305_v50, %v365_v47  ;;  %v960_v58 = vunpack.c.h.bf16 %v6084_v56  ;;  %v366_v54 = vunpack.c.l.bf16 %v6218_v48 }
  0x97   : > { %7619 = vst [vmem:[#allocation32_spill] sm:$0xff] %v6220_v32  ;;  %v367_v22 = vunpack.c.h.bf16 %v6218_v48  ;;  %v6241_v21 = vsub.f32 %v6015_v27, %v957_v57  ;;  %v6244_v36 = vsub.f32 %v6018_v28, %v958_v0  ;;  %v310_v42 = vmul.f32 %v6095_v62, %v6095_v62 }
  0x98   : > { %v311_v47 = vmul.f32 %v6098_v63, %v6098_v63  ;;  %v6251_v50 = vsub.f32 %v6041_v37, %v959_v4  ;;  %v6254_v55 = vsub.f32 %v6044_v38, %v960_v58  ;;  %v6258_v56 = vpack.c.bf16 %v6226_v9, %v6224_v14 }
  0x99   : > { %7620 = vst [vmem:[#allocation33_spill] sm:$0xff] %v6241_v21  ;;  %v368_v27 = vunpack.c.l.bf16 %v6220_v32  ;;  %v369_v0 = vunpack.c.h.bf16 %v6220_v32  ;;  %v6266_v57 = vpack.c.bf16 %v6234_v46, %v6232_v8  ;;  %v312_v4 = vmul.f32 %v6003_v19, %v5961_v1 }
  0x9a   : > { %v313_v37 = vmul.f32 %v6006_v20, %v5963_v2  ;;  %v1036_v38 = vpack.c.bf16 %v6254_v55, %v6251_v50  ;;  %v6274_v58 = vsub.f32 %v306_v23, %v366_v54  ;;  %v6276_v25 = vsub.f32 %v307_v31, %v367_v22 }
  0x9b   : > { %v6278_v32 = vpack.c.bf16 %v311_v47, %v310_v42  ;;  %v6282_v28 = vsub.f32 %v308_v61, %v368_v27  ;;  %v961_v21 = vunpack.c.l.bf16 %v6090_v59  ;;  %v962_v1 = vunpack.c.h.bf16 %v6090_v59 }
  0x9c   : > { %v6288_v2 = vsub.f32 %v309_v39, %v369_v0  ;;  %v6290_v19 = vpack.c.bf16 %v313_v37, %v312_v4  ;;  %v963_v20 = vunpack.c.l.bf16 %v6128_v24  ;;  %v964_v23 = vunpack.c.h.bf16 %v6128_v24 }
  0x9d   : > { %4775 = vmatmul.mubr.msk.bf16.gmra.mrb[12].mxu0 %vm446_vm0, %v6168_v60  ;;  %v6296_v31 = vpack.c.bf16 %v6276_v25, %v6274_v58  ;;  %v314_v61 = vmul.f32 %v6021_v29, %v5965_v3  ;;  %v6301_v59 = vsub.f32 %v6066_v49, %v961_v21  ;;  %v6304_v54 = vsub.f32 %v6073_v52, %v962_v1 }
  0x9e   : > { %4778 = vmatprep.mubr.msk.bf16.mxu0 %vm446_vm0, %v6162_v53  ;;  %v370_v39 = vunpack.c.l.bf16 %v6278_v32  ;;  %v315_v22 = vmul.f32 %v6024_v30, %v5972_v5  ;;  %v6310_v24 = vsub.f32 %v6105_v13, %v963_v20  ;;  %v6313_v27 = vsub.f32 %v6108_v15, %v964_v23  ;;  %v7624_v13 = vld [vmem:[#allocation13_spill] sm:$0xff] }
  0x9f   : > { %v371_v0 = vunpack.c.h.bf16 %v6278_v32  ;;  %v316_v3 = vmul.f32 %v6031_v33, %v5974_v6  ;;  %v317_v29 = vmul.f32 %v6034_v34, %v5976_v7  ;;  %v1037_v49 = vpack.c.bf16 %v6304_v54, %v6301_v59 }
  0xa0   : > { %v6324_v5 = vpack.c.bf16 %v6288_v2, %v6282_v28  ;;  %v372_v30 = vunpack.c.l.bf16 %v6290_v19  ;;  %v373_v52 = vunpack.c.h.bf16 %v6290_v19  ;;  %v6330_v15 = vsub.f32 %v310_v42, %v370_v39 }
  0xa1   : > { %v6332_v6 = vpack.c.bf16 %v315_v22, %v314_v61  ;;  %v6336_v7 = vsub.f32 %v311_v47, %v371_v0  ;;  %v6338_v33 = vpack.c.bf16 %v317_v29, %v316_v3  ;;  %v965_v34 = vunpack.c.l.bf16 %v6136_v35 }
  0xa2   : > { %v966_v21 = vunpack.c.h.bf16 %v6136_v35  ;;  %v6344_v1 = vsub.f32 %v312_v4, %v372_v30  ;;  %v6346_v42 = vsub.f32 %v313_v37, %v373_v52  ;;  %v967_v20 = vunpack.c.l.bf16 %v6168_v60 }
  0xa3   : > { %v968_v23 = vunpack.c.h.bf16 %v6168_v60  ;;  %v6351_v47 = vsub.f32 %v6117_v17, %v965_v34  ;;  %v318_v35 = vmul.f32 %v6095_v62, %v5987_v10  ;;  %v319_v0 = vmul.f32 %v6098_v63, %v5989_v11 }
  0xa4   : > { %v6354_v39 = vsub.f32 %v6120_v18, %v966_v21  ;;  %v6361_v4 = vsub.f32 %v6149_v44, %v967_v20  ;;  %v6368_v60 = vpack.c.bf16 %v6336_v7, %v6330_v15  ;;  %v374_v17 = vunpack.c.l.bf16 %v6332_v6 }
  0xa5   : > { %4779 = vmatmul.mubr.msk.bf16.gmra.mrb[16].mxu0 %vm446_vm0, %v6208_v40  ;;  %v6364_v37 = vsub.f32 %v6152_v45, %v968_v23  ;;  %v375_v18 = vunpack.c.h.bf16 %v6332_v6  ;;  %v6376_v11 = vpack.c.bf16 %v6346_v42, %v6344_v1  ;;  %v376_v62 = vunpack.c.l.bf16 %v6338_v33 }
  0xa6   : > { %4782 = vmatprep.mubr.msk.bf16.mxu0 %vm446_vm0, %v6214_v26  ;;  %v377_v63 = vunpack.c.h.bf16 %v6338_v33  ;;  %v6382_v45 = vpack.c.bf16 %v319_v0, %v318_v35  ;;  %v6386_v30 = vsub.f32 %v314_v61, %v374_v17  ;;  %v969_v34 = vunpack.c.l.bf16 %v6162_v53 }
  0xa7   : > { %v6388_v52 = vsub.f32 %v315_v22, %v375_v18  ;;  %v970_v21 = vunpack.c.h.bf16 %v6162_v53  ;;  %v6394_v20 = vsub.f32 %v316_v3, %v376_v62  ;;  %v971_v44 = vunpack.c.l.bf16 %v6208_v40 }
  0xa8   : > { %v6396_v23 = vsub.f32 %v317_v29, %v377_v63  ;;  %v972_v10 = vunpack.c.h.bf16 %v6208_v40  ;;  %v6401_v61 = vsub.f32 %v6142_v41, %v969_v34  ;;  %v378_v29 = vunpack.c.l.bf16 %v6382_v45  ;;  %v7623_v41 = vld [vmem:[#allocation15_spill] sm:$0xff] }
  0xa9   : > { %v6404_v22 = vsub.f32 %v6144_v43, %v970_v21  ;;  %v6407_v17 = vsub.f32 %v6182_v51, %v971_v44  ;;  %v437_v3 = vpack.c.bf16 %v6388_v52, %v6386_v30  ;;  %v379_v18 = vunpack.c.h.bf16 %v6382_v45  ;;  %v7621_v21 = vld [vmem:[#allocation30_spill] sm:$0xff] }
  0xaa   : > { %v6410_v53 = vsub.f32 %v6184_v12, %v972_v10  ;;  %v6420_v43 = vpack.c.bf16 %v6396_v23, %v6394_v20  ;;  %v6425_v12 = vsub.f32 %v318_v35, %v378_v29  ;;  %v973_v10 = vunpack.c.l.bf16 %v6214_v26 }
  0xab   : > { %v6427_v40 = vsub.f32 %v319_v0, %v379_v18  ;;  %v974_v62 = vunpack.c.h.bf16 %v6214_v26  ;;  %v975_v63 = vunpack.c.l.bf16 %v6258_v56  ;;  %v976_v44 = vunpack.c.h.bf16 %v6258_v56  ;;  %v7622_v18 = vld [vmem:[#allocation14_spill] sm:$0xff] }
  0xac   : > { %v6436_v34 = vsub.f32 %v6190_v16, %v973_v10  ;;  %v980_v10 = vunpack.c.h.bf16 %v6296_v31  ;;  %v7647_v50 = vpack.c.bf16 %v6364_v37, %v6361_v4  ;;  %v7648_v55 = vpack.c.bf16 %v6404_v22, %v6401_v61 }
  0xad   : > { %4783 = vmatmul.mubr.msk.bf16.gmra.mrb[20].mxu0 %vm446_vm0, %v6258_v56  ;;  %v6439_v51 = vsub.f32 %v7621_v21, %v974_v62  ;;  %v6442_v35 = vsub.f32 %v6224_v14, %v975_v63  ;;  %v6445_v0 = vsub.f32 %v6226_v9, %v976_v44  ;;  %v6449_v26 = vpack.c.bf16 %v6427_v40, %v6425_v12 }
  0xae   : > { %4786 = vmatprep.mubr.msk.bf16.mxu0 %vm446_vm0, %v6266_v57  ;;  %v977_v56 = vunpack.c.l.bf16 %v6266_v57  ;;  %v978_v14 = vunpack.c.h.bf16 %v6266_v57  ;;  %v979_v9 = vunpack.c.l.bf16 %v6296_v31  ;;  %v1020_v21 = vsub.f32 %v6276_v25, %v980_v10 }
  0xaf   : > { %v981_v57 = vunpack.c.l.bf16 %v6324_v5  ;;  %v986_v10 = vunpack.c.h.bf16 %v6376_v11  ;;  %v7650_v59 = vpack.c.bf16 %v6439_v51, %v6436_v34  ;;  %v7651_v54 = vpack.c.bf16 %v6445_v0, %v6442_v35 }
  0xb0   : > { %v1017_v62 = vsub.f32 %v6232_v8, %v977_v56  ;;  %v1018_v63 = vsub.f32 %v6234_v46, %v978_v14  ;;  %v1019_v44 = vsub.f32 %v6274_v58, %v979_v9  ;;  %v983_v8 = vunpack.c.l.bf16 %v6368_v60 }
  0xb1   : > { %v984_v46 = vunpack.c.h.bf16 %v6368_v60  ;;  %v1021_v58 = vsub.f32 %v6282_v28, %v981_v57  ;;  %v988_v28 = vunpack.c.h.bf16 %v437_v3  ;;  %v7628_v57 = vld [vmem:[#allocation19_spill] sm:$0xff]  ;;  %v7567_v22 = vmov 0.0  }
  0xb2   : > { %v1045_v16 = vpack.c.bf16 %v1018_v63, %v1017_v62  ;;  %v1046_v29 = vpack.c.bf16 %v1020_v21, %v1019_v44  ;;  %v1023_v56 = vsub.f32 %v6330_v15, %v983_v8  ;;  %v7627_v62 = vld [vmem:[#allocation18_spill] sm:$0xff]  ;;  %v1026_v15 = vsub.f32 %v6346_v42, %v986_v10  ;;  %v7633_v42 = vld [vmem:[#allocation28_spill] sm:$0xff]  ;;  %4976 = vmatprep.subr.bf16.mxu1 %v7567_v22 }
  0xb3   : > { %v1028_v63 = vsub.f32 %v6388_v52, %v988_v28  ;;  %v7635_v52 = vld [vmem:[#allocation31_spill] sm:$0xff]  ;;  %v7637_v8 = vld [vmem:[#allocation22_spill] sm:$0xff]  ;;  %4978 = vmatprep.mubr.msk.bf16.mxu1 %vm5717_vm1, %v7567_v22  ;;  %v6598_v10 = vld [vmem:[#allocation7] sm:$0xff]  }
  0xb5   : > { %4787 = vmatmul.mubr.msk.bf16.gmra.mrb[24].mxu0 %vm446_vm0, %v6296_v31  ;;  %v7625_v31 = vld [vmem:[#allocation16_spill] sm:$0xff] }
  0xb6   : > { %4790 = vmatprep.mubr.msk.bf16.mxu0 %vm446_vm0, %v6324_v5 }
  0xbd   : > { %4791 = vmatmul.mubr.msk.bf16.gmra.mrb[28].mxu0 %vm446_vm0, %v6368_v60  ;;  %v987_v60 = vunpack.c.l.bf16 %v437_v3 }
  0xbe   : > { %4794 = vmatprep.mubr.msk.bf16.mxu0 %vm446_vm0, %v6376_v11 }
  0xc5   : > { %4795 = vmatmul.mubr.msk.bf16.gmra.mrb[32].mxu0 %vm446_vm0, %v437_v3  ;;  %v7631_v3 = vld [vmem:[#allocation25_spill] sm:$0xff] }
  0xc6   : > { %4798 = vmatprep.mubr.msk.bf16.mxu0 %vm446_vm0, %v6420_v43 }
  0xcd   : > { %4799 = vmatmul.mubr.msk.bf16.gmra.mrb[36].mxu0 %vm446_vm0, %v6449_v26 }
  0xce   : > { %4804 = vmatprep.mubr.msk.bf16.mxu0 %vm446_vm0, %v7622_v18  ;;  %v982_v18 = vunpack.c.h.bf16 %v6324_v5  ;;  %v7626_v5 = vld [vmem:[#allocation17_spill] sm:$0xff] }
  0xd0   : > { %v1022_v25 = vsub.f32 %v6288_v2, %v982_v18  ;;  %v7629_v18 = vld [vmem:[#allocation20_spill] sm:$0xff] }
  0xd2   : > { %v1047_v14 = vpack.c.bf16 %v1022_v25, %v1021_v58  ;;  %v7640_v58 = vld [vmem:[#allocation24_spill] sm:$0xff]  ;;  %v7641_v25 = vld [vmem:[#allocation23_spill] sm:$0xff] }
  0xd5   : > { %4805 = vmatmul.mubr.msk.bf16.vlgmr.msra.gmra.mrb[0].mxu0 %vm446_vm0, %v7623_v41  ;;  %v1024_v41 = vsub.f32 %v6336_v7, %v984_v46  ;;  %v1027_v7 = vsub.f32 %v6386_v30, %v987_v60  ;;  %v7634_v30 = vld [vmem:[#allocation29_spill] sm:$0xff] }
  0xd6   : > { %4845 = vmatpush3.bf16.msra.mxu0 %v7624_v13  ;;  %4808 = vmatprep.mubr.msk.bf16.mxu0 %vm446_vm0, %v7625_v31  ;;  %v985_v13 = vunpack.c.l.bf16 %v6376_v11  ;;  %v7630_v11 = vld [vmem:[#allocation26_spill] sm:$0xff]  ;;  %v7636_v31 = vld [vmem:[#allocation32_spill] sm:$0xff] }
  0xd7   : > { %v1048_v9 = vpack.c.bf16 %v1024_v41, %v1023_v56  ;;  %v1050_v21 = vpack.c.bf16 %v1028_v63, %v1027_v7  ;;  %4886 = vmatprep.subr.bf16.mxu0 %v7567_v22 }
  0xd8   : > { %v1025_v2 = vsub.f32 %v6344_v1, %v985_v13  ;;  %v7632_v1 = vld [vmem:[#allocation27_spill] sm:$0xff] }
  0xda   : > { %v1049_v44 = vpack.c.bf16 %v1026_v15, %v1025_v2 }
  0xdd   : > { %4809 = vmatmul.mubr.msk.bf16.gmra.mrb[4].mxu0 %vm446_vm0, %v7626_v5 }
  0xde   : > { %4812 = vmatprep.mubr.msk.bf16.mxu0 %vm446_vm0, %v7627_v62 }
  0xe5   : > { %4813 = vmatmul.mubr.msk.bf16.gmra.mrb[8].mxu0 %vm446_vm0, %v7628_v57 }
  0xe6   : > { %4816 = vmatprep.mubr.msk.bf16.mxu0 %vm446_vm0, %v7629_v18 }
  0xed   : > { %4817 = vmatmul.mubr.msk.bf16.gmra.mrb[12].mxu0 %vm446_vm0, %v7630_v11 }
  0xee   : > { %4820 = vmatprep.mubr.msk.bf16.mxu0 %vm446_vm0, %v7631_v3 }
  0xf5   : > { %4821 = vmatmul.mubr.msk.bf16.gmra.mrb[16].mxu0 %vm446_vm0, %v7632_v1 }
  0xf6   : > { %4824 = vmatprep.mubr.msk.bf16.mxu0 %vm446_vm0, %v7633_v42 }
  0xfd   : > { %4825 = vmatmul.mubr.msk.bf16.gmra.mrb[20].mxu0 %vm446_vm0, %v7634_v30 }
  0xfe   : > { %4828 = vmatprep.mubr.msk.bf16.mxu0 %vm446_vm0, %v7635_v52 }
 0x105   : > { %4829 = vmatmul.mubr.msk.bf16.gmra.mrb[24].mxu0 %vm446_vm0, %v6218_v48  ;;  %v7638_v48 = vld [vmem:[#allocation21_spill] sm:$0xff] }
 0x106   : > { %4832 = vmatprep.mubr.msk.bf16.mxu0 %vm446_vm0, %v7636_v31  ;;  %v7639_v46 = vpack.c.bf16 %v7637_v8, %v7638_v48 }
 0x10d   : > { %4833 = vmatmul.mubr.msk.bf16.gmra.mrb[28].mxu0 %vm446_vm0, %v6278_v32  ;;  %v7642_v32 = vpack.c.bf16 %v7640_v58, %v7641_v25 }
 0x10e   : > { %4836 = vmatprep.mubr.msk.bf16.mxu0 %vm446_vm0, %v6290_v19  ;;  %v7643_v19 = vld [vmem:[#allocation33_spill] sm:$0xff] }
 0x10f   : > { %v7644_v56 = vpack.c.bf16 %v6244_v36, %v7643_v19  ;;  %v7646_v36 = vpack.c.bf16 %v6354_v39, %v6351_v47  ;;  %v991_v47 = vunpack.c.l.bf16 %v6449_v26  ;;  %v992_v39 = vunpack.c.h.bf16 %v6449_v26 }
 0x111   : > { %v1031_v37 = vsub.f32 %v6425_v12, %v991_v47 }
 0x115   : > { %4837 = vmatmul.mubr.msk.bf16.gmra.mrb[32].mxu0 %vm446_vm0, %v6332_v6  ;;  %v7645_v6 = vpack.c.bf16 %v6313_v27, %v6310_v24  ;;  %v989_v24 = vunpack.c.l.bf16 %v6420_v43  ;;  %v990_v27 = vunpack.c.h.bf16 %v6420_v43 }
 0x116   : > { %4840 = vmatprep.mubr.msk.bf16.mxu0 %vm446_vm0, %v6338_v33 }
 0x117   : > { %v1030_v33 = vsub.f32 %v6396_v23, %v990_v27 }
 0x11d   : > { %4841 = vmatmul.mubr.msk.bf16.gmra.mrb[36].mxu0 %vm446_vm0, %v6382_v45  ;;  %v1032_v45 = vsub.f32 %v6427_v40, %v992_v39 }
 0x11e   : > { %4846 = vmatprep.mubr.msk.bf16.mxu0 %vm446_vm0, %v7639_v46 }
 0x11f   : > { %v1052_v61 = vpack.c.bf16 %v1032_v45, %v1031_v37 }
 0x125   : > { %4847 = vmatmul.mubr.msk.bf16.vlgmr.msra.gmra.mrb[0].mxu0 %vm446_vm0, %v7642_v32 }
 0x126   : > { %4850 = vmatprep.mubr.msk.bf16.mxu0 %vm446_vm0, %v7644_v56 }
 0x12d   : > { %4851 = vmatmul.mubr.msk.bf16.gmra.mrb[4].mxu0 %vm446_vm0, %v1036_v38  ;;  %v7649_v38 = vpack.c.bf16 %v6410_v53, %v6407_v17 }
 0x12e   : > { %4854 = vmatprep.mubr.msk.bf16.mxu0 %vm446_vm0, %v1037_v49  ;;  %v1029_v49 = vsub.f32 %v6394_v20, %v989_v24 }
 0x130   : > { %v1051_v4 = vpack.c.bf16 %v1030_v33, %v1029_v49 }
 0x135   : > { %4855 = vmatmul.mubr.msk.bf16.gmra.mrb[8].mxu0 %vm446_vm0, %v7645_v6 }
 0x136   : > { %4858 = vmatprep.mubr.msk.bf16.mxu0 %vm446_vm0, %v7646_v36 }
 0x13d   : > { %4859 = vmatmul.mubr.msk.bf16.gmra.mrb[12].mxu0 %vm446_vm0, %v7647_v50 }
 0x13e   : > { %4862 = vmatprep.mubr.msk.bf16.mxu0 %vm446_vm0, %v7648_v55 }
 0x145   : > { %4863 = vmatmul.mubr.msk.bf16.gmra.mrb[16].mxu0 %vm446_vm0, %v7649_v38 }
 0x146   : > { %4866 = vmatprep.mubr.msk.bf16.mxu0 %vm446_vm0, %v7650_v59 }
 0x14d   : > { %4867 = vmatmul.mubr.msk.bf16.gmra.mrb[20].mxu0 %vm446_vm0, %v7651_v54 }
 0x14e   : > { %4870 = vmatprep.mubr.msk.bf16.mxu0 %vm446_vm0, %v1045_v16 }
 0x155   : > { %4871 = vmatmul.mubr.msk.bf16.gmra.mrb[24].mxu0 %vm446_vm0, %v1046_v29 }
 0x156   : > { %4874 = vmatprep.mubr.msk.bf16.mxu0 %vm446_vm0, %v1047_v14 }
 0x15d   : > { %4875 = vmatmul.mubr.msk.bf16.gmra.mrb[28].mxu0 %vm446_vm0, %v1048_v9 }
 0x15e   : > { %4878 = vmatprep.mubr.msk.bf16.mxu0 %vm446_vm0, %v1049_v44 }
 0x165   : > { %4879 = vmatmul.mubr.msk.bf16.gmra.mrb[32].mxu0 %vm446_vm0, %v1050_v21 }
 0x166   : > { %4882 = vmatprep.mubr.msk.bf16.mxu0 %vm446_vm0, %v1051_v4 }
 0x16d   : > { %4883 = vmatmul.mubr.msk.bf16.gmra.mrb[36].mxu0 %vm446_vm0, %v1052_v61 }
 0x16e   : > { %4888 = vmatprep.mubr.msk.bf16.mxu0 %vm5717_vm1, %v7567_v22 }
 0x1f8   : > { %v4848_v20 = vpop.f32.mrb[0].mxu0 }
 0x1f9   : > { %v1147_v23 = vpop.f32.mrb[1].mxu0 }
 0x1fa   : > { %v4849_v17 = vpop.f32.mrb[2].mxu0 }
 0x1fb   : > { %v6590_v53 = vpack.c.bf16 %v4849_v17, %v4848_v20  ;;  %v1150_v43 = vpop.f32.mrb[3].mxu0 }
 0x1fc   : > { %v6592_v51 = vpack.c.bf16 %v1150_v43, %v1147_v23 }
 0x1fd   : > { %v1368_v12 = vunpack.c.l.bf16 %v6590_v53  ;;  %v1369_v40 = vunpack.c.h.bf16 %v6590_v53 }
 0x1fe   : > { %v1366_v34 = vunpack.c.l.bf16 %v6592_v51  ;;  %v1367_v35 = vunpack.c.h.bf16 %v6592_v51 }
 0x1ff   : > { %v1408_v0 = vsub.f32 %v4848_v20, %v1368_v12  ;;  %v1409_v26 = vsub.f32 %v4849_v17, %v1369_v40 }
 0x200   : > { %v1406_v29 = vsub.f32 %v1147_v23, %v1366_v34  ;;  %v1407_v16 = vsub.f32 %v1150_v43, %v1367_v35  ;;  %v4852_v41 = vpop.f32.mrb[4].mxu0 }
 0x201   : > { %v1447_v14 = vpack.c.bf16 %v1409_v26, %v1408_v0  ;;  %v1163_v9 = vpop.f32.mrb[5].mxu0 }
 0x202   : > { %v1446_v5 = vpack.c.bf16 %v1407_v16, %v1406_v29  ;;  %v4853_v13 = vpop.f32.mrb[6].mxu0 }
 0x203   : > { %v3116_v62 = vunpack.c.l.bf16 %v1447_v14  ;;  %v3117_v60 = vunpack.c.h.bf16 %v1447_v14  ;;  %v6600_v28 = vpack.c.bf16 %v4853_v13, %v4852_v41  ;;  %v1166_v2 = vpop.f32.mrb[7].mxu0 }
 0x204   : > { %v3114_v15 = vunpack.c.l.bf16 %v1446_v5  ;;  %v3115_v7 = vunpack.c.h.bf16 %v1446_v5  ;;  %v6602_v63 = vpack.c.bf16 %v1166_v2, %v1163_v9  ;;  %4887 = vmatpush3.bf16.msra.mxu0 %v1446_v5 }
 0x205   : > { %v6604_v44 = vsub.f32 %v1408_v0, %v3116_v62  ;;  %v6606_v21 = vsub.f32 %v1409_v26, %v3117_v60  ;;  %v1372_v57 = vunpack.c.l.bf16 %v6600_v28  ;;  %v1373_v18 = vunpack.c.h.bf16 %v6600_v28  ;;  %4892 = vmatprep.subr.bf16.mxu0 %v7567_v22 }
 0x206   : > { %v6611_v11 = vsub.f32 %v1406_v29, %v3114_v15  ;;  %v6613_v3 = vsub.f32 %v1407_v16, %v3115_v7  ;;  %v1370_v1 = vunpack.c.l.bf16 %v6602_v63  ;;  %v1371_v42 = vunpack.c.h.bf16 %v6602_v63 }
 0x207   : > { %v1412_v52 = vsub.f32 %v4852_v41, %v1372_v57  ;;  %v1413_v31 = vsub.f32 %v4853_v13, %v1373_v18  ;;  %4889 = vmatmul.mubr.msk.bf16.vlgmr.msra.gmra.mrb[40].mxu0 %vm446_vm0, %v6598_v10 }
 0x208   : > { %v1410_v48 = vsub.f32 %v1163_v9, %v1370_v1  ;;  %v1411_v46 = vsub.f32 %v1166_v2, %v1371_v42  ;;  %v4856_v58 = vpop.f32.mrb[8].mxu0  ;;  %4893 = vmatpush3.bf16.msra.mxu0 %v1447_v14  ;;  %4894 = vmatprep.mubr.msk.bf16.mxu0 %vm5717_vm1, %v7567_v22 }
 0x209   : > { %v1449_v25 = vpack.c.bf16 %v1413_v31, %v1412_v52  ;;  %v1179_v32 = vpop.f32.mrb[9].mxu0  ;;  %4898 = vmatprep.subr.bf16.mxu0 %v7567_v22 }
 0x20a   : > { %v1448_v19 = vpack.c.bf16 %v1411_v46, %v1410_v48  ;;  %v4857_v56 = vpop.f32.mrb[10].mxu0 }
 0x20b   : > { %v3120_v6 = vunpack.c.l.bf16 %v1449_v25  ;;  %v3121_v36 = vunpack.c.h.bf16 %v1449_v25  ;;  %v6626_v50 = vpack.c.bf16 %v4857_v56, %v4856_v58  ;;  %v1182_v55 = vpop.f32.mrb[11].mxu0 }
 0x20c   : > { %v3118_v38 = vunpack.c.l.bf16 %v1448_v19  ;;  %v3119_v59 = vunpack.c.h.bf16 %v1448_v19  ;;  %v6628_v54 = vpack.c.bf16 %v1182_v55, %v1179_v32 }
 0x20d   : > { %v6630_v24 = vsub.f32 %v1412_v52, %v3120_v6  ;;  %v6632_v27 = vsub.f32 %v1413_v31, %v3121_v36  ;;  %v1376_v49 = vunpack.c.l.bf16 %v6626_v50  ;;  %v1377_v33 = vunpack.c.h.bf16 %v6626_v50 }
 0x20e   : > { %v6636_v47 = vsub.f32 %v1410_v48, %v3118_v38  ;;  %v6638_v39 = vsub.f32 %v1411_v46, %v3119_v59  ;;  %v1374_v4 = vunpack.c.l.bf16 %v6628_v54  ;;  %v1375_v37 = vunpack.c.h.bf16 %v6628_v54 }
 0x20f   : > { %v1416_v61 = vsub.f32 %v4856_v58, %v1376_v49  ;;  %v1417_v20 = vsub.f32 %v4857_v56, %v1377_v33  ;;  %4895 = vmatmul.mubr.msk.bf16.vlgmr.msra.gmra.mrb[44].mxu0 %vm446_vm0, %v6598_v10 }
 0x210   : > { %v1414_v17 = vsub.f32 %v1179_v32, %v1374_v4  ;;  %v1415_v43 = vsub.f32 %v1182_v55, %v1375_v37  ;;  %4899 = vmatpush3.bf16.msra.mxu0 %v1448_v19  ;;  %v4860_v12 = vpop.f32.mrb[12].mxu0  ;;  %4900 = vmatprep.mubr.msk.bf16.mxu0 %vm5717_vm1, %v7567_v22 }
 0x211   : > { %v6650_v40 = vpack.c.bf16 %v1417_v20, %v1416_v61  ;;  %v1195_v34 = vpop.f32.mrb[13].mxu0  ;;  %4904 = vmatprep.subr.bf16.mxu0 %v7567_v22 }
 0x212   : > { %v1450_v35 = vpack.c.bf16 %v1415_v43, %v1414_v17  ;;  %v4861_v0 = vpop.f32.mrb[14].mxu0 }
 0x213   : > { %v3124_v26 = vunpack.c.l.bf16 %v6650_v40  ;;  %v3125_v29 = vunpack.c.h.bf16 %v6650_v40  ;;  %v6655_v16 = vpack.c.bf16 %v4861_v0, %v4860_v12  ;;  %v1198_v41 = vpop.f32.mrb[15].mxu0 }
 0x214   : > { %v3122_v14 = vunpack.c.l.bf16 %v1450_v35  ;;  %v3123_v9 = vunpack.c.h.bf16 %v1450_v35  ;;  %v6657_v5 = vpack.c.bf16 %v1198_v41, %v1195_v34 }
 0x215   : > { %v6659_v13 = vsub.f32 %v1416_v61, %v3124_v26  ;;  %v6661_v62 = vsub.f32 %v1417_v20, %v3125_v29  ;;  %v1380_v60 = vunpack.c.l.bf16 %v6655_v16  ;;  %v1381_v2 = vunpack.c.h.bf16 %v6655_v16 }
 0x216   : > { %v6665_v15 = vsub.f32 %v1414_v17, %v3122_v14  ;;  %v6667_v7 = vsub.f32 %v1415_v43, %v3123_v9  ;;  %v1378_v57 = vunpack.c.l.bf16 %v6657_v5  ;;  %v1379_v18 = vunpack.c.h.bf16 %v6657_v5 }
 0x217   : > { %v1420_v42 = vsub.f32 %v4860_v12, %v1380_v60  ;;  %v1421_v52 = vsub.f32 %v4861_v0, %v1381_v2  ;;  %4901 = vmatmul.mubr.msk.bf16.vlgmr.msra.gmra.mrb[48].mxu0 %vm446_vm0, %v6598_v10 }
 0x218   : > { %v1418_v48 = vsub.f32 %v1195_v34, %v1378_v57  ;;  %v1419_v46 = vsub.f32 %v1198_v41, %v1379_v18  ;;  %4905 = vmatpush3.bf16.msra.mxu0 %v1449_v25  ;;  %v4864_v58 = vpop.f32.mrb[16].mxu0  ;;  %4906 = vmatprep.mubr.msk.bf16.mxu0 %vm5717_vm1, %v7567_v22 }
 0x219   : > { %v6679_v32 = vpack.c.bf16 %v1421_v52, %v1420_v42  ;;  %v1211_v19 = vpop.f32.mrb[17].mxu0  ;;  %4910 = vmatprep.subr.bf16.mxu0 %v7567_v22 }
 0x21a   : > { %v6682_v56 = vpack.c.bf16 %v1419_v46, %v1418_v48  ;;  %v4865_v6 = vpop.f32.mrb[18].mxu0 }
 0x21b   : > { %v3128_v36 = vunpack.c.l.bf16 %v6679_v32  ;;  %v3129_v55 = vunpack.c.h.bf16 %v6679_v32  ;;  %v6686_v38 = vpack.c.bf16 %v4865_v6, %v4864_v58  ;;  %v1214_v59 = vpop.f32.mrb[19].mxu0 }
 0x21c   : > { %v3126_v25 = vunpack.c.l.bf16 %v6682_v56  ;;  %v3127_v49 = vunpack.c.h.bf16 %v6682_v56  ;;  %v6690_v33 = vpack.c.bf16 %v1214_v59, %v1211_v19 }
 0x21d   : > { %v6692_v4 = vsub.f32 %v1420_v42, %v3128_v36  ;;  %v6694_v37 = vsub.f32 %v1421_v52, %v3129_v55  ;;  %v1384_v61 = vunpack.c.l.bf16 %v6686_v38  ;;  %v1385_v20 = vunpack.c.h.bf16 %v6686_v38 }
 0x21e   : > { %v6698_v17 = vsub.f32 %v1418_v48, %v3126_v25  ;;  %v6700_v43 = vsub.f32 %v1419_v46, %v3127_v49  ;;  %v1382_v12 = vunpack.c.l.bf16 %v6690_v33  ;;  %v1383_v34 = vunpack.c.h.bf16 %v6690_v33 }
 0x21f   : > { %7652 = vst [vmem:[#allocation30_spill] sm:$0xff] %v6692_v4  ;;  %7653 = vst [vmem:[#allocation14_spill] sm:$0xff] %v6694_v37  ;;  %v1424_v26 = vsub.f32 %v4864_v58, %v1384_v61  ;;  %v1425_v29 = vsub.f32 %v4865_v6, %v1385_v20  ;;  %4907 = vmatmul.mubr.msk.bf16.vlgmr.msra.gmra.mrb[52].mxu0 %vm446_vm0, %v6598_v10 }
 0x220   : > { %v1422_v14 = vsub.f32 %v1211_v19, %v1382_v12  ;;  %v1423_v9 = vsub.f32 %v1214_v59, %v1383_v34  ;;  %4911 = vmatpush3.bf16.msra.mxu0 %v1450_v35  ;;  %v4868_v60 = vpop.f32.mrb[20].mxu0  ;;  %4912 = vmatprep.mubr.msk.bf16.mxu0 %vm5717_vm1, %v7567_v22 }
 0x221   : > { %v6712_v2 = vpack.c.bf16 %v1425_v29, %v1424_v26  ;;  %v1227_v57 = vpop.f32.mrb[21].mxu0  ;;  %4916 = vmatprep.subr.bf16.mxu0 %v7567_v22 }
 0x222   : > { %v6715_v18 = vpack.c.bf16 %v1423_v9, %v1422_v14  ;;  %v4869_v42 = vpop.f32.mrb[22].mxu0 }
 0x223   : > { %v3132_v52 = vunpack.c.l.bf16 %v6712_v2  ;;  %v3133_v48 = vunpack.c.h.bf16 %v6712_v2  ;;  %v6719_v46 = vpack.c.bf16 %v4869_v42, %v4868_v60  ;;  %v1230_v58 = vpop.f32.mrb[23].mxu0 }
 0x224   : > { %v3130_v35 = vunpack.c.l.bf16 %v6715_v18  ;;  %v3131_v19 = vunpack.c.h.bf16 %v6715_v18  ;;  %v6723_v6 = vpack.c.bf16 %v1230_v58, %v1227_v57 }
 0x225   : > { %v6725_v36 = vsub.f32 %v1424_v26, %v3132_v52  ;;  %v6727_v55 = vsub.f32 %v1425_v29, %v3133_v48  ;;  %v1388_v59 = vunpack.c.l.bf16 %v6719_v46  ;;  %v1389_v25 = vunpack.c.h.bf16 %v6719_v46 }
 0x226   : > { %v6731_v49 = vsub.f32 %v1422_v14, %v3130_v35  ;;  %v6733_v61 = vsub.f32 %v1423_v9, %v3131_v19  ;;  %v1386_v20 = vunpack.c.l.bf16 %v6723_v6  ;;  %v1387_v12 = vunpack.c.h.bf16 %v6723_v6 }
 0x227   : > { %7654 = vst [vmem:[#allocation15_spill] sm:$0xff] %v6725_v36  ;;  %7655 = vst [vmem:[#allocation13_spill] sm:$0xff] %v6727_v55  ;;  %v1428_v0 = vsub.f32 %v4868_v60, %v1388_v59  ;;  %v1429_v26 = vsub.f32 %v4869_v42, %v1389_v25  ;;  %4913 = vmatmul.mubr.msk.bf16.vlgmr.msra.gmra.mrb[56].mxu0 %vm446_vm0, %v6598_v10 }
 0x228   : > { %7656 = vst [vmem:[#allocation16_spill] sm:$0xff] %v6731_v49  ;;  %7657 = vst [vmem:[#allocation17_spill] sm:$0xff] %v6733_v61  ;;  %v1426_v52 = vsub.f32 %v1227_v57, %v1386_v20  ;;  %v1427_v14 = vsub.f32 %v1230_v58, %v1387_v12  ;;  %4917 = vmatpush3.bf16.msra.mxu0 %v6650_v40  ;;  %v4872_v9 = vpop.f32.mrb[24].mxu0  ;;  %4918 = vmatprep.mubr.msk.bf16.mxu0 %vm5717_vm1, %v7567_v22 }
 0x229   : > { %v6746_v48 = vpack.c.bf16 %v1429_v26, %v1428_v0  ;;  %v1243_v35 = vpop.f32.mrb[25].mxu0  ;;  %4922 = vmatprep.subr.bf16.mxu0 %v7567_v22 }
 0x22a   : > { %v6749_v60 = vpack.c.bf16 %v1427_v14, %v1426_v52  ;;  %v4873_v42 = vpop.f32.mrb[26].mxu0 }
 0x22b   : > { %v3136_v19 = vunpack.c.l.bf16 %v6746_v48  ;;  %v3137_v59 = vunpack.c.h.bf16 %v6746_v48  ;;  %v6753_v57 = vpack.c.bf16 %v4873_v42, %v4872_v9  ;;  %v1246_v58 = vpop.f32.mrb[27].mxu0 }
 0x22c   : > { %v3134_v40 = vunpack.c.l.bf16 %v6749_v60  ;;  %v3135_v25 = vunpack.c.h.bf16 %v6749_v60  ;;  %v6757_v20 = vpack.c.bf16 %v1246_v58, %v1243_v35 }
 0x22d   : > { %v6759_v12 = vsub.f32 %v1428_v0, %v3136_v19  ;;  %v6761_v34 = vsub.f32 %v1429_v26, %v3137_v59  ;;  %v1392_v29 = vunpack.c.l.bf16 %v6753_v57  ;;  %v1393_v41 = vunpack.c.h.bf16 %v6753_v57 }
 0x22e   : > { %v6765_v1 = vsub.f32 %v1426_v52, %v3134_v40  ;;  %v6767_v31 = vsub.f32 %v1427_v14, %v3135_v25  ;;  %v1390_v45 = vunpack.c.l.bf16 %v6757_v20  ;;  %v1391_v23 = vunpack.c.h.bf16 %v6757_v20 }
 0x22f   : > { %7658 = vst [vmem:[#allocation18_spill] sm:$0xff] %v6759_v12  ;;  %7659 = vst [vmem:[#allocation19_spill] sm:$0xff] %v6761_v34  ;;  %v1432_v8 = vsub.f32 %v4872_v9, %v1392_v29  ;;  %v1433_v0 = vsub.f32 %v4873_v42, %v1393_v41  ;;  %4919 = vmatmul.mubr.msk.bf16.vlgmr.msra.gmra.mrb[60].mxu0 %vm446_vm0, %v6598_v10 }
 0x230   : > { %7660 = vst [vmem:[#allocation20_spill] sm:$0xff] %v6765_v1  ;;  %7661 = vst [vmem:[#allocation26_spill] sm:$0xff] %v6767_v31  ;;  %v1430_v19 = vsub.f32 %v1243_v35, %v1390_v45  ;;  %v1431_v52 = vsub.f32 %v1246_v58, %v1391_v23  ;;  %4923 = vmatpush3.bf16.msra.mxu0 %v6682_v56  ;;  %v4876_v14 = vpop.f32.mrb[28].mxu0  ;;  %4924 = vmatprep.mubr.msk.bf16.mxu0 %vm5717_vm1, %v7567_v22 }
 0x231   : > { %v6780_v59 = vpack.c.bf16 %v1433_v0, %v1432_v8  ;;  %v1259_v40 = vpop.f32.mrb[29].mxu0  ;;  %4928 = vmatprep.subr.bf16.mxu0 %v7567_v22 }
 0x232   : > { %v6783_v41 = vpack.c.bf16 %v1431_v52, %v1430_v19  ;;  %v4877_v29 = vpop.f32.mrb[30].mxu0 }
 0x233   : > { %v3140_v9 = vunpack.c.l.bf16 %v6780_v59  ;;  %v3141_v42 = vunpack.c.h.bf16 %v6780_v59  ;;  %v6787_v45 = vpack.c.bf16 %v4877_v29, %v4876_v14  ;;  %v1262_v23 = vpop.f32.mrb[31].mxu0 }
 0x234   : > { %v3138_v56 = vunpack.c.l.bf16 %v6783_v41  ;;  %v3139_v35 = vunpack.c.h.bf16 %v6783_v41  ;;  %v6791_v58 = vpack.c.bf16 %v1262_v23, %v1259_v40 }
 0x235   : > { %v6793_v25 = vsub.f32 %v1432_v8, %v3140_v9  ;;  %v6795_v30 = vsub.f32 %v1433_v0, %v3141_v42  ;;  %v1396_v26 = vunpack.c.l.bf16 %v6787_v45  ;;  %v1397_v22 = vunpack.c.h.bf16 %v6787_v45 }
 0x236   : > { %v6799_v12 = vsub.f32 %v1430_v19, %v3138_v56  ;;  %v6801_v34 = vsub.f32 %v1431_v52, %v3139_v35  ;;  %v1394_v1 = vunpack.c.l.bf16 %v6791_v58  ;;  %v1395_v31 = vunpack.c.h.bf16 %v6791_v58 }
 0x237   : > { %7662 = vst [vmem:[#allocation25_spill] sm:$0xff] %v6793_v25  ;;  %7663 = vst [vmem:[#allocation27_spill] sm:$0xff] %v6795_v30  ;;  %v1436_v55 = vsub.f32 %v4876_v14, %v1396_v26  ;;  %v1437_v8 = vsub.f32 %v4877_v29, %v1397_v22  ;;  %4925 = vmatmul.mubr.msk.bf16.vlgmr.msra.gmra.mrb[64].mxu0 %vm446_vm0, %v6598_v10  ;;  %v7666_v42 = vmov 0.0  }
 0x238   : > { %7664 = vst [vmem:[#allocation28_spill] sm:$0xff] %v6799_v12  ;;  %7665 = vst [vmem:[#allocation29_spill] sm:$0xff] %v6801_v34  ;;  %v1434_v9 = vsub.f32 %v1259_v40, %v1394_v1  ;;  %v1435_v19 = vsub.f32 %v1262_v23, %v1395_v31  ;;  %4929 = vmatpush3.bf16.msra.mxu0 %v6679_v32  ;;  %v4880_v52 = vpop.f32.mrb[32].mxu0  ;;  %4930 = vmatprep.mubr.msk.bf16.mxu0 %vm5717_vm1, %v7666_v42 }
 0x239   : > { %v1461_v56 = vpack.c.bf16 %v1437_v8, %v1436_v55  ;;  %v1275_v35 = vpop.f32.mrb[33].mxu0  ;;  %4934 = vmatprep.subr.bf16.mxu0 %v7666_v42 }
 0x23a   : > { %v6815_v26 = vpack.c.bf16 %v1435_v19, %v1434_v9  ;;  %v4881_v22 = vpop.f32.mrb[34].mxu0 }
 0x23b   : > { %v3144_v14 = vunpack.c.l.bf16 %v1461_v56  ;;  %v3145_v29 = vunpack.c.h.bf16 %v1461_v56  ;;  %v6817_v36 = vpack.c.bf16 %v4881_v22, %v4880_v52  ;;  %v1278_v0 = vpop.f32.mrb[35].mxu0  ;;  %4977 = vmatpush3.bf16.msra.mxu1 %v1461_v56 }
 0x23c   : > { %v3142_v1 = vunpack.c.l.bf16 %v6815_v26  ;;  %v3143_v31 = vunpack.c.h.bf16 %v6815_v26  ;;  %v6821_v32 = vpack.c.bf16 %v1278_v0, %v1275_v35  ;;  %4982 = vmatprep.subr.bf16.mxu1 %v7666_v42 }
 0x23d   : > { %v6824_v40 = vsub.f32 %v1436_v55, %v3144_v14  ;;  %v6826_v23 = vsub.f32 %v1437_v8, %v3145_v29  ;;  %v1400_v25 = vunpack.c.l.bf16 %v6817_v36  ;;  %v1401_v30 = vunpack.c.h.bf16 %v6817_v36 }
 0x23e   : > { %v6830_v12 = vsub.f32 %v1434_v9, %v3142_v1  ;;  %v6832_v34 = vsub.f32 %v1435_v19, %v3143_v31  ;;  %v1398_v56 = vunpack.c.l.bf16 %v6821_v32  ;;  %v1399_v49 = vunpack.c.h.bf16 %v6821_v32  ;;  %4979 = vmatmul.mubr.msk.bf16.vlgmr.msra.gmra.mrb[0].mxu1 %vm446_vm0, %v6598_v10 }
 0x23f   : > { %7667 = vst [vmem:[#allocation31_spill] sm:$0xff] %v6824_v40  ;;  %7668 = vst [vmem:[#allocation32_spill] sm:$0xff] %v6826_v23  ;;  %v1440_v8 = vsub.f32 %v4880_v52, %v1400_v25  ;;  %v1441_v14 = vsub.f32 %v4881_v22, %v1401_v30  ;;  %4931 = vmatmul.mubr.msk.bf16.vlgmr.msra.gmra.mrb[68].mxu0 %vm446_vm0, %v6598_v10  ;;  %4984 = vmatprep.mubr.msk.bf16.mxu1 %vm5717_vm1, %v7666_v42 }
 0x240   : > { %7669 = vst [vmem:[#allocation22_spill] sm:$0xff] %v6830_v12  ;;  %7670 = vst [vmem:[#allocation21_spill] sm:$0xff] %v6832_v34  ;;  %v1438_v19 = vsub.f32 %v1275_v35, %v1398_v56  ;;  %v1439_v29 = vsub.f32 %v1278_v0, %v1399_v49  ;;  %4935 = vmatpush3.bf16.msra.mxu0 %v6715_v18  ;;  %v4884_v1 = vpop.f32.mrb[36].mxu0  ;;  %4936 = vmatprep.mubr.msk.bf16.mxu0 %vm5717_vm1, %v7666_v42 }
 0x241   : > { %v1463_v31 = vpack.c.bf16 %v1441_v14, %v1440_v8  ;;  %v1291_v25 = vpop.f32.mrb[37].mxu0  ;;  %4940 = vmatprep.subr.bf16.mxu0 %v7666_v42 }
 0x242   : > { %v1462_v30 = vpack.c.bf16 %v1439_v29, %v1438_v19  ;;  %v4885_v52 = vpop.f32.mrb[38].mxu0 }
 0x243   : > { %v3148_v22 = vunpack.c.l.bf16 %v1463_v31  ;;  %v3149_v55 = vunpack.c.h.bf16 %v1463_v31  ;;  %v6850_v40 = vpack.c.bf16 %v4885_v52, %v4884_v1  ;;  %v1294_v23 = vpop.f32.mrb[39].mxu0 }
 0x244   : > { %v3146_v9 = vunpack.c.l.bf16 %v1462_v30  ;;  %v3147_v35 = vunpack.c.h.bf16 %v1462_v30  ;;  %v6852_v49 = vpack.c.bf16 %v1294_v23, %v1291_v25  ;;  %4983 = vmatpush3.bf16.msra.mxu1 %v1462_v30 }
 0x245   : > { %v6854_v18 = vsub.f32 %v1440_v8, %v3148_v22  ;;  %v6856_v0 = vsub.f32 %v1441_v14, %v3149_v55  ;;  %v1404_v56 = vunpack.c.l.bf16 %v6850_v40  ;;  %v1405_v12 = vunpack.c.h.bf16 %v6850_v40  ;;  %4988 = vmatprep.subr.bf16.mxu1 %v7666_v42 }
 0x246   : > { %v6861_v34 = vsub.f32 %v1438_v19, %v3146_v9  ;;  %v6863_v61 = vsub.f32 %v1439_v29, %v3147_v35  ;;  %v1402_v4 = vunpack.c.l.bf16 %v6852_v49  ;;  %v1403_v37 = vunpack.c.h.bf16 %v6852_v49 }
 0x247   : > { %v3211_v8 = vpack.c.bf16 %v6856_v0, %v6854_v18  ;;  %v1444_v30 = vsub.f32 %v4884_v1, %v1404_v56  ;;  %v1445_v55 = vsub.f32 %v4885_v52, %v1405_v12  ;;  %4937 = vmatmul.mubr.msk.bf16.vlgmr.msra.gmra.mrb[72].mxu0 %vm446_vm0, %v6598_v10  ;;  %4985 = vmatmul.mubr.msk.bf16.vlgmr.msra.gmra.mrb[4].mxu1 %vm446_vm0, %v6598_v10 }
 0x248   : > { %v3210_v14 = vpack.c.bf16 %v6863_v61, %v6861_v34  ;;  %v1442_v9 = vsub.f32 %v1291_v25, %v1402_v4  ;;  %v1443_v19 = vsub.f32 %v1294_v23, %v1403_v37  ;;  %4941 = vmatpush3.bf16.msra.mxu0 %v6712_v2  ;;  %4989 = vmatpush3.bf16.msra.mxu1 %v1463_v31 }
 0x249   : > { %v1465_v29 = vpack.c.bf16 %v1445_v55, %v1444_v30  ;;  %4942 = vmatprep.mubr.msk.bf16.mxu0 %vm5717_vm1, %v7666_v42  ;;  %4946 = vmatprep.subr.bf16.mxu0 %v7666_v42 }
 0x24a   : > { %v1464_v12 = vpack.c.bf16 %v1443_v19, %v1442_v9  ;;  %4990 = vmatprep.mubr.msk.bf16.mxu1 %vm5717_vm1, %v7666_v42  ;;  %4994 = vmatprep.subr.bf16.mxu1 %v7666_v42 }
 0x24b   : > { %v3152_v1 = vunpack.c.l.bf16 %v1465_v29  ;;  %v3153_v52 = vunpack.c.h.bf16 %v1465_v29 }
 0x24c   : > { %v3150_v22 = vunpack.c.l.bf16 %v1464_v12  ;;  %v3151_v4 = vunpack.c.h.bf16 %v1464_v12 }
 0x24d   : > { %v6882_v37 = vsub.f32 %v1444_v30, %v3152_v1  ;;  %v6884_v2 = vsub.f32 %v1445_v55, %v3153_v52  ;;  %v7699_v30 = vld [vmem:[#allocation21_spill] sm:$0xff]  ;;  %v7700_v55 = vld [vmem:[#allocation22_spill] sm:$0xff]  ;;  %v7702_v52 = vld [vmem:[#allocation32_spill] sm:$0xff] }
 0x24e   : > { %v6886_v23 = vsub.f32 %v1442_v9, %v3150_v22  ;;  %v6888_v31 = vsub.f32 %v1443_v19, %v3151_v4  ;;  %v7701_v9 = vpack.c.bf16 %v7699_v30, %v7700_v55  ;;  %v7703_v22 = vld [vmem:[#allocation31_spill] sm:$0xff] }
 0x24f   : > { %v3213_v25 = vpack.c.bf16 %v6884_v2, %v6882_v37  ;;  %4943 = vmatmul.mubr.msk.bf16.vlgmr.msra.gmra.mrb[76].mxu0 %vm446_vm0, %v6598_v10  ;;  %4991 = vmatmul.mubr.msk.bf16.vlgmr.msra.gmra.mrb[8].mxu1 %vm446_vm0, %v6598_v10  ;;  %v7704_v4 = vpack.c.bf16 %v7702_v52, %v7703_v22 }
 0x250   : > { %v3212_v35 = vpack.c.bf16 %v6888_v31, %v6886_v23  ;;  %4947 = vmatpush3.bf16.msra.mxu0 %v6749_v60  ;;  %4995 = vmatpush3.bf16.msra.mxu1 %v1464_v12 }
 0x251   : > { %4948 = vmatprep.mubr.msk.bf16.mxu0 %vm5717_vm1, %v7666_v42  ;;  %4952 = vmatprep.subr.bf16.mxu0 %v7666_v42 }
 0x252   : > { %4996 = vmatprep.mubr.msk.bf16.mxu1 %vm5717_vm1, %v7666_v42  ;;  %5000 = vmatprep.subr.bf16.mxu1 %v7666_v42 }
 0x257   : > { %4949 = vmatmul.mubr.msk.bf16.vlgmr.msra.gmra.mrb[80].mxu0 %vm446_vm0, %v6598_v10  ;;  %4997 = vmatmul.mubr.msk.bf16.vlgmr.msra.gmra.mrb[12].mxu1 %vm446_vm0, %v6598_v10 }
 0x258   : > { %4953 = vmatpush3.bf16.msra.mxu0 %v6746_v48  ;;  %5001 = vmatpush3.bf16.msra.mxu1 %v1465_v29  ;;  %v7694_v48 = vld [vmem:[#allocation28_spill] sm:$0xff] }
 0x259   : > { %4954 = vmatprep.mubr.msk.bf16.mxu0 %vm5717_vm1, %v7666_v42  ;;  %4958 = vmatprep.subr.bf16.mxu0 %v7666_v42 }
 0x25a   : > { %5002 = vmatprep.mubr.msk.bf16.mxu1 %vm5717_vm1, %v7666_v42  ;;  %5006 = vmatprep.subr.bf16.mxu1 %v7666_v42 }
 0x25f   : > { %4955 = vmatmul.mubr.msk.bf16.vlgmr.msra.gmra.mrb[84].mxu0 %vm446_vm0, %v6598_v10  ;;  %5003 = vmatmul.mubr.msk.bf16.vlgmr.msra.gmra.mrb[16].mxu1 %vm446_vm0, %v6598_v10 }
 0x260   : > { %4959 = vmatpush3.bf16.msra.mxu0 %v6783_v41  ;;  %5007 = vmatpush3.bf16.msra.mxu1 %v6592_v51  ;;  %v7672_v51 = vpack.c.bf16 %v6606_v21, %v6604_v44  ;;  %v7675_v21 = vpack.c.bf16 %v6667_v7, %v6665_v15  ;;  %v7687_v15 = vld [vmem:[#allocation26_spill] sm:$0xff]  ;;  %v7688_v7 = vld [vmem:[#allocation20_spill] sm:$0xff] }
 0x261   : > { %4960 = vmatprep.mubr.msk.bf16.mxu0 %vm5717_vm1, %v7666_v42  ;;  %4964 = vmatprep.subr.bf16.mxu0 %v7666_v42 }
 0x262   : > { %5008 = vmatprep.mubr.msk.bf16.mxu1 %vm5717_vm1, %v7666_v42  ;;  %5012 = vmatprep.subr.bf16.mxu1 %v7666_v42 }
 0x267   : > { %4961 = vmatmul.mubr.msk.bf16.vlgmr.msra.gmra.mrb[88].mxu0 %vm446_vm0, %v6598_v10  ;;  %5009 = vmatmul.mubr.msk.bf16.vlgmr.msra.gmra.mrb[20].mxu1 %vm446_vm0, %v6598_v10 }
 0x268   : > { %4965 = vmatpush3.bf16.msra.mxu0 %v6780_v59  ;;  %5013 = vmatpush3.bf16.msra.mxu1 %v6590_v53  ;;  %v7671_v53 = vpack.c.bf16 %v6613_v3, %v6611_v11  ;;  %v7676_v3 = vpack.c.bf16 %v6661_v62, %v6659_v13  ;;  %v7685_v13 = vld [vmem:[#allocation15_spill] sm:$0xff] }
 0x269   : > { %4966 = vmatprep.mubr.msk.bf16.mxu0 %vm5717_vm1, %v7666_v42  ;;  %4970 = vmatprep.subr.bf16.mxu0 %v7666_v42 }
 0x26a   : > { %5014 = vmatprep.mubr.msk.bf16.mxu1 %vm5717_vm1, %v7666_v42  ;;  %5018 = vmatprep.subr.bf16.mxu1 %v7666_v42 }
 0x26f   : > { %4967 = vmatmul.mubr.msk.bf16.vlgmr.msra.gmra.mrb[92].mxu0 %vm446_vm0, %v6598_v10  ;;  %5015 = vmatmul.mubr.msk.bf16.vlgmr.msra.gmra.mrb[24].mxu1 %vm446_vm0, %v6598_v10 }
 0x270   : > { %4971 = vmatpush3.bf16.msra.mxu0 %v6815_v26  ;;  %5019 = vmatpush3.bf16.msra.mxu1 %v6602_v63  ;;  %v7674_v63 = vpack.c.bf16 %v6632_v27, %v6630_v24  ;;  %v7679_v24 = vld [vmem:[#allocation30_spill] sm:$0xff] }
 0x271   : > { %5020 = vmatprep.mubr.msk.bf16.mxu1 %vm5717_vm1, %v7666_v42  ;;  %5024 = vmatprep.subr.bf16.mxu1 %v7666_v42 }
 0x272   : > { %4972 = vmatprep.mubr.msk.bf16.mxu0 %vm5717_vm1, %v7666_v42 }
 0x277   : > { %5021 = vmatmul.mubr.msk.bf16.vlgmr.msra.gmra.mrb[28].mxu1 %vm446_vm0, %v6598_v10  ;;  %4973 = vmatmul.mubr.msk.bf16.vlgmr.msra.gmra.mrb[96].mxu0 %vm446_vm0, %v6598_v10 }
 0x278   : > { %5025 = vmatpush3.bf16.msra.mxu1 %v6600_v28  ;;  %5026 = vmatprep.mubr.msk.bf16.mxu1 %vm5717_vm1, %v7666_v42  ;;  %v7673_v28 = vpack.c.bf16 %v6638_v39, %v6636_v47  ;;  %v7681_v47 = vld [vmem:[#allocation17_spill] sm:$0xff]  ;;  %v7682_v39 = vld [vmem:[#allocation16_spill] sm:$0xff] }
 0x279   : > { %5030 = vmatprep.subr.bf16.mxu1 %v7666_v42 }
 0x27f   : > { %5027 = vmatmul.mubr.msk.bf16.vlgmr.msra.gmra.mrb[32].mxu1 %vm446_vm0, %v6598_v10 }
 0x280   : > { %5031 = vmatpush3.bf16.msra.mxu1 %v6628_v54  ;;  %5032 = vmatprep.mubr.msk.bf16.mxu1 %vm5717_vm1, %v7666_v42  ;;  %v7678_v54 = vld [vmem:[#allocation14_spill] sm:$0xff] }
 0x281   : > { %5036 = vmatprep.subr.bf16.mxu1 %v7666_v42  ;;  %v7680_v27 = vpack.c.bf16 %v7678_v54, %v7679_v24 }
 0x287   : > { %5033 = vmatmul.mubr.msk.bf16.vlgmr.msra.gmra.mrb[36].mxu1 %vm446_vm0, %v6598_v10 }
 0x288   : > { %5037 = vmatpush3.bf16.msra.mxu1 %v6626_v50  ;;  %5038 = vmatprep.mubr.msk.bf16.mxu1 %vm5717_vm1, %v7666_v42  ;;  %v7677_v50 = vpack.c.bf16 %v6700_v43, %v6698_v17  ;;  %v7691_v17 = vld [vmem:[#allocation18_spill] sm:$0xff] }
 0x289   : > { %5042 = vmatprep.subr.bf16.mxu1 %v7666_v42 }
 0x28f   : > { %5039 = vmatmul.mubr.msk.bf16.vlgmr.msra.gmra.mrb[40].mxu1 %vm446_vm0, %v6598_v10 }
 0x290   : > { %5043 = vmatpush3.bf16.msra.mxu1 %v6657_v5  ;;  %5044 = vmatprep.mubr.msk.bf16.mxu1 %vm5717_vm1, %v7666_v42  ;;  %v7684_v5 = vld [vmem:[#allocation13_spill] sm:$0xff] }
 0x291   : > { %5048 = vmatprep.subr.bf16.mxu1 %v7666_v42  ;;  %v7686_v62 = vpack.c.bf16 %v7684_v5, %v7685_v13 }
 0x297   : > { %5045 = vmatmul.mubr.msk.bf16.vlgmr.msra.gmra.mrb[44].mxu1 %vm446_vm0, %v6598_v10 }
 0x298   : > { %5049 = vmatpush3.bf16.msra.mxu1 %v6655_v16  ;;  %5050 = vmatprep.mubr.msk.bf16.mxu1 %vm5717_vm1, %v7666_v42  ;;  %v7683_v16 = vpack.c.bf16 %v7681_v47, %v7682_v39  ;;  %v5544_v47 = vld [vmem:[#allocation7] sm:$0xff]  }
 0x299   : > { %5054 = vmatprep.subr.bf16.mxu1 %v7666_v42 }
 0x29f   : > { %5051 = vmatmul.mubr.msk.bf16.vlgmr.msra.gmra.mrb[48].mxu1 %vm446_vm0, %v6598_v10 }
 0x2a0   : > { %5055 = vmatpush3.bf16.msra.mxu1 %v6690_v33  ;;  %5056 = vmatprep.mubr.msk.bf16.mxu1 %vm5717_vm1, %v7666_v42  ;;  %v7690_v33 = vld [vmem:[#allocation19_spill] sm:$0xff] }
 0x2a1   : > { %5060 = vmatprep.subr.bf16.mxu1 %v7666_v42  ;;  %v7692_v43 = vpack.c.bf16 %v7690_v33, %v7691_v17 }
 0x2a7   : > { %5057 = vmatmul.mubr.msk.bf16.vlgmr.msra.gmra.mrb[52].mxu1 %vm446_vm0, %v6598_v10 }
 0x2a8   : > { %5061 = vmatpush3.bf16.msra.mxu1 %v6686_v38  ;;  %5062 = vmatprep.mubr.msk.bf16.mxu1 %vm5717_vm1, %v7666_v42  ;;  %v7689_v38 = vpack.c.bf16 %v7687_v15, %v7688_v7 }
 0x2a9   : > { %5066 = vmatprep.subr.bf16.mxu1 %v7666_v42 }
 0x2af   : > { %5063 = vmatmul.mubr.msk.bf16.vlgmr.msra.gmra.mrb[56].mxu1 %vm446_vm0, %v6598_v10 }
 0x2b0   : > { %5067 = vmatpush3.bf16.msra.mxu1 %v6723_v6  ;;  %5068 = vmatprep.mubr.msk.bf16.mxu1 %vm5717_vm1, %v7666_v42 }
 0x2b1   : > { %5072 = vmatprep.subr.bf16.mxu1 %v7666_v42 }
 0x2b7   : > { %5069 = vmatmul.mubr.msk.bf16.vlgmr.msra.gmra.mrb[60].mxu1 %vm446_vm0, %v6598_v10 }
 0x2b8   : > { %5073 = vmatpush3.bf16.msra.mxu1 %v6719_v46  ;;  %5074 = vmatprep.mubr.msk.bf16.mxu1 %vm5717_vm1, %v7666_v42 }
 0x2b9   : > { %5078 = vmatprep.subr.bf16.mxu1 %v7666_v42 }
 0x2bf   : > { %5075 = vmatmul.mubr.msk.bf16.vlgmr.msra.gmra.mrb[64].mxu1 %vm446_vm0, %v6598_v10 }
 0x2c0   : > { %5079 = vmatpush3.bf16.msra.mxu1 %v6757_v20  ;;  %5080 = vmatprep.mubr.msk.bf16.mxu1 %vm5717_vm1, %v7666_v42 }
 0x2c1   : > { %5084 = vmatprep.subr.bf16.mxu1 %v7666_v42 }
 0x2c7   : > { %5081 = vmatmul.mubr.msk.bf16.vlgmr.msra.gmra.mrb[68].mxu1 %vm446_vm0, %v6598_v10 }
 0x2c8   : > { %5085 = vmatpush3.bf16.msra.mxu1 %v6753_v57  ;;  %5086 = vmatprep.mubr.msk.bf16.mxu1 %vm5717_vm1, %v7666_v42 }
 0x2c9   : > { %5090 = vmatprep.subr.bf16.mxu1 %v7666_v42 }
 0x2cf   : > { %5087 = vmatmul.mubr.msk.bf16.vlgmr.msra.gmra.mrb[72].mxu1 %vm446_vm0, %v6598_v10 }
 0x2d0   : > { %5091 = vmatpush3.bf16.msra.mxu1 %v6791_v58  ;;  %5092 = vmatprep.mubr.msk.bf16.mxu1 %vm5717_vm1, %v7666_v42  ;;  %v7697_v58 = vld [vmem:[#allocation25_spill] sm:$0xff] }
 0x2d1   : > { %5096 = vmatprep.subr.bf16.mxu1 %v7666_v42 }
 0x2d7   : > { %5093 = vmatmul.mubr.msk.bf16.vlgmr.msra.gmra.mrb[76].mxu1 %vm446_vm0, %v6598_v10 }
 0x2d8   : > { %5097 = vmatpush3.bf16.msra.mxu1 %v6787_v45  ;;  %5098 = vmatprep.mubr.msk.bf16.mxu1 %vm5717_vm1, %v7666_v42  ;;  %v7696_v45 = vld [vmem:[#allocation27_spill] sm:$0xff] }
 0x2d9   : > { %5102 = vmatprep.subr.bf16.mxu1 %v7666_v42  ;;  %v7698_v26 = vpack.c.bf16 %v7696_v45, %v7697_v58 }
 0x2da   : > { %v7089_v44 = vpop.f32.mrb[40].mxu0 }
 0x2db   : > { %v4890_v11 = vpop.f32.mrb[41].mxu0 }
 0x2dc   : > { %v7153_v46 = vpop.f32.mrb[42].mxu0 }
 0x2dd   : > { %v4891_v6 = vpop.f32.mrb[43].mxu0 }
 0x2df   : > { %5099 = vmatmul.mubr.msk.bf16.vlgmr.msra.gmra.mrb[0].mxu1 %vm446_vm0, %v6598_v10 }
 0x2e0   : > { %5103 = vmatpush3.bf16.msra.mxu1 %v6821_v32  ;;  %5104 = vmatprep.mubr.msk.bf16.mxu1 %vm5717_vm1, %v7666_v42 }
 0x2e1   : > { %5108 = vmatprep.subr.bf16.mxu1 %v7666_v42 }
 0x2e2   : > { %v7163_v57 = vpop.f32.mrb[44].mxu0 }
 0x2e3   : > { %v4896_v20 = vpop.f32.mrb[45].mxu0 }
 0x2e4   : > { %v7165_v59 = vpop.f32.mrb[46].mxu0 }
 0x2e5   : > { %v4897_v41 = vpop.f32.mrb[47].mxu0 }
 0x2e7   : > { %5105 = vmatmul.mubr.msk.bf16.vlgmr.msra.gmra.mrb[4].mxu1 %vm446_vm0, %v6598_v10 }
 0x2e8   : > { %5109 = vmatpush3.bf16.msra.mxu1 %v6817_v36  ;;  %5110 = vmatprep.mubr.msk.bf16.mxu1 %vm5717_vm1, %v7666_v42  ;;  %v7693_v36 = vld [vmem:[#allocation29_spill] sm:$0xff] }
 0x2e9   : > { %5114 = vmatprep.subr.bf16.mxu1 %v7666_v42  ;;  %v7695_v60 = vpack.c.bf16 %v7693_v36, %v7694_v48 }
 0x2ea   : > { %v7175_v32 = vpop.f32.mrb[48].mxu0 }
 0x2ef   : > { %5111 = vmatmul.mubr.msk.bf16.vlgmr.msra.gmra.mrb[8].mxu1 %vm446_vm0, %v6598_v10 }
 0x2f0   : > { %5115 = vmatpush3.bf16.msra.mxu1 %v6852_v49  ;;  %5116 = vmatprep.mubr.msk.bf16.mxu1 %vm5717_vm1, %v7666_v42 }
 0x2f1   : > { %5120 = vmatprep.subr.bf16.mxu1 %v7666_v42 }
 0x2f7   : > { %5117 = vmatmul.mubr.msk.bf16.vlgmr.msra.gmra.mrb[12].mxu1 %vm446_vm0, %v6598_v10 }
 0x2f8   : > { %5121 = vmatpush3.bf16.msra.mxu1 %v6850_v40  ;;  %5122 = vmatprep.mubr.msk.bf16.mxu1 %vm5717_vm1, %v7666_v42  ;;  %v4902_v40 = vpop.f32.mrb[49].mxu0 }
 0x2f9   : > { %5126 = vmatprep.subr.bf16.mxu1 %v7666_v42  ;;  %v7177_v49 = vpop.f32.mrb[50].mxu0 }
 0x2fa   : > { %v4903_v56 = vpop.f32.mrb[51].mxu0 }
 0x2fb   : > { %v7187_v19 = vpop.f32.mrb[52].mxu0 }
 0x2fc   : > { %v4908_v29 = vpop.f32.mrb[53].mxu0 }
 0x2fd   : > { %v7189_v12 = vpop.f32.mrb[54].mxu0 }
 0x2fe   : > { %v4909_v1 = vpop.f32.mrb[55].mxu0 }
 0x2ff   : > { %5123 = vmatmul.mubr.msk.bf16.vlgmr.msra.gmra.mrb[16].mxu1 %vm446_vm0, %v6598_v10 }
 0x300   : > { %5127 = vmatpush3.bf16.msra.mxu1 %v7671_v53  ;;  %5128 = vmatprep.mubr.msk.bf16.mxu1 %vm5717_vm1, %v7666_v42  ;;  %v7199_v53 = vpop.f32.mrb[56].mxu0 }
 0x301   : > { %5132 = vmatprep.subr.bf16.mxu1 %v7666_v42 }
 0x307   : > { %5129 = vmatmul.mubr.msk.bf16.vlgmr.msra.gmra.mrb[20].mxu1 %vm446_vm0, %v6598_v10 }
 0x308   : > { %5133 = vmatpush3.bf16.msra.mxu1 %v7672_v51  ;;  %5134 = vmatprep.mubr.msk.bf16.mxu1 %vm5717_vm1, %v7666_v42  ;;  %v4914_v51 = vpop.f32.mrb[57].mxu0 }
 0x309   : > { %5138 = vmatprep.subr.bf16.mxu1 %v7666_v42 }
 0x30f   : > { %5135 = vmatmul.mubr.msk.bf16.vlgmr.msra.gmra.mrb[24].mxu1 %vm446_vm0, %v6598_v10 }
 0x310   : > { %5139 = vmatpush3.bf16.msra.mxu1 %v7673_v28  ;;  %5140 = vmatprep.mubr.msk.bf16.mxu1 %vm5717_vm1, %v7666_v42  ;;  %v7201_v28 = vpop.f32.mrb[58].mxu0 }
 0x311   : > { %5144 = vmatprep.subr.bf16.mxu1 %v7666_v42 }
 0x317   : > { %5141 = vmatmul.mubr.msk.bf16.vlgmr.msra.gmra.mrb[28].mxu1 %vm446_vm0, %v6598_v10 }
 0x318   : > { %5145 = vmatpush3.bf16.msra.mxu1 %v7674_v63  ;;  %5146 = vmatprep.mubr.msk.bf16.mxu1 %vm5717_vm1, %v7666_v42  ;;  %v4915_v63 = vpop.f32.mrb[59].mxu0 }
 0x319   : > { %5150 = vmatprep.subr.bf16.mxu1 %v7666_v42 }
 0x31f   : > { %5147 = vmatmul.mubr.msk.bf16.vlgmr.msra.gmra.mrb[32].mxu1 %vm446_vm0, %v6598_v10 }
 0x320   : > { %5151 = vmatpush3.bf16.msra.mxu1 %v7675_v21  ;;  %5152 = vmatprep.mubr.msk.bf16.mxu1 %vm5717_vm1, %v7666_v42  ;;  %v7211_v21 = vpop.f32.mrb[60].mxu0 }
 0x321   : > { %5156 = vmatprep.subr.bf16.mxu1 %v7666_v42  ;;  %v4920_v11 = vpop.f32.mrb[61].mxu0 }
 0x327   : > { %5153 = vmatmul.mubr.msk.bf16.vlgmr.msra.gmra.mrb[36].mxu1 %vm446_vm0, %v6598_v10 }
 0x328   : > { %5157 = vmatpush3.bf16.msra.mxu1 %v7676_v3  ;;  %5158 = vmatprep.mubr.msk.bf16.mxu1 %vm5717_vm1, %v7666_v42  ;;  %v7213_v3 = vpop.f32.mrb[62].mxu0 }
 0x329   : > { %5162 = vmatprep.subr.bf16.mxu1 %v7666_v42 }
 0x32f   : > { %5159 = vmatmul.mubr.msk.bf16.vlgmr.msra.gmra.mrb[40].mxu1 %vm446_vm0, %v6598_v10 }
 0x330   : > { %5163 = vmatpush3.bf16.msra.mxu1 %v7677_v50  ;;  %5164 = vmatprep.mubr.msk.bf16.mxu1 %vm5717_vm1, %v7666_v42  ;;  %v4921_v50 = vpop.f32.mrb[63].mxu0 }
 0x331   : > { %5168 = vmatprep.subr.bf16.mxu1 %v7666_v42  ;;  %v7223_v61 = vpop.f32.mrb[64].mxu0 }
 0x332   : > { %v4926_v34 = vpop.f32.mrb[65].mxu0 }
 0x337   : > { %5165 = vmatmul.mubr.msk.bf16.vlgmr.msra.gmra.mrb[44].mxu1 %vm446_vm0, %v6598_v10 }
 0x338   : > { %5169 = vmatpush3.bf16.msra.mxu1 %v7680_v27  ;;  %5170 = vmatprep.mubr.msk.bf16.mxu1 %vm5717_vm1, %v7666_v42 }
 0x339   : > { %5174 = vmatprep.subr.bf16.mxu1 %v7666_v42 }
 0x33f   : > { %5171 = vmatmul.mubr.msk.bf16.vlgmr.msra.gmra.mrb[48].mxu1 %vm446_vm0, %v6598_v10 }
 0x340   : > { %5175 = vmatpush3.bf16.msra.mxu1 %v7683_v16  ;;  %5176 = vmatprep.mubr.msk.bf16.mxu1 %vm5717_vm1, %v7666_v42 }
 0x341   : > { %5180 = vmatprep.subr.bf16.mxu1 %v7666_v42 }
 0x347   : > { %5177 = vmatmul.mubr.msk.bf16.vlgmr.msra.gmra.mrb[52].mxu1 %vm446_vm0, %v6598_v10 }
 0x348   : > { %5181 = vmatpush3.bf16.msra.mxu1 %v7686_v62  ;;  %5182 = vmatprep.mubr.msk.bf16.mxu1 %vm5717_vm1, %v7666_v42 }
 0x349   : > { %5186 = vmatprep.subr.bf16.mxu1 %v7666_v42 }
 0x34f   : > { %5183 = vmatmul.mubr.msk.bf16.vlgmr.msra.gmra.mrb[56].mxu1 %vm446_vm0, %v6598_v10 }
 0x350   : > { %5187 = vmatpush3.bf16.msra.mxu1 %v7689_v38  ;;  %5188 = vmatprep.mubr.msk.bf16.mxu1 %vm5717_vm1, %v7666_v42 }
 0x351   : > { %5192 = vmatprep.subr.bf16.mxu1 %v7666_v42 }
 0x357   : > { %5189 = vmatmul.mubr.msk.bf16.vlgmr.msra.gmra.mrb[60].mxu1 %vm446_vm0, %v6598_v10 }
 0x358   : > { %5193 = vmatpush3.bf16.msra.mxu1 %v7692_v43  ;;  %5194 = vmatprep.mubr.msk.bf16.mxu1 %vm5717_vm1, %v7666_v42 }
 0x359   : > { %5198 = vmatprep.subr.bf16.mxu1 %v7666_v42 }
 0x35f   : > { %5195 = vmatmul.mubr.msk.bf16.vlgmr.msra.gmra.mrb[64].mxu1 %vm446_vm0, %v6598_v10 }
 0x360   : > { %5199 = vmatpush3.bf16.msra.mxu1 %v7695_v60  ;;  %5200 = vmatprep.mubr.msk.bf16.mxu1 %vm5717_vm1, %v7666_v42 }
 0x361   : > { %5204 = vmatprep.subr.bf16.mxu1 %v7666_v42 }
 0x367   : > { %5201 = vmatmul.mubr.msk.bf16.vlgmr.msra.gmra.mrb[68].mxu1 %vm446_vm0, %v6598_v10 }
 0x368   : > { %5205 = vmatpush3.bf16.msra.mxu1 %v7698_v26  ;;  %5206 = vmatprep.mubr.msk.bf16.mxu1 %vm5717_vm1, %v7666_v42 }
 0x369   : > { %5210 = vmatprep.subr.bf16.mxu1 %v7666_v42 }
 0x36f   : > { %5207 = vmatmul.mubr.msk.bf16.vlgmr.msra.gmra.mrb[72].mxu1 %vm446_vm0, %v6598_v10 }
 0x370   : > { %5211 = vmatpush3.bf16.msra.mxu1 %v7701_v9  ;;  %5212 = vmatprep.mubr.msk.bf16.mxu1 %vm5717_vm1, %v7666_v42 }
 0x371   : > { %5216 = vmatprep.subr.bf16.mxu1 %v7666_v42 }
 0x377   : > { %5213 = vmatmul.mubr.msk.bf16.vlgmr.msra.gmra.mrb[76].mxu1 %vm446_vm0, %v6598_v10 }
 0x378   : > { %5217 = vmatpush3.bf16.msra.mxu1 %v7704_v4  ;;  %5218 = vmatprep.mubr.msk.bf16.mxu1 %vm5717_vm1, %v7666_v42 }
 0x379   : > { %5222 = vmatprep.subr.bf16.mxu1 %v7666_v42 }
 0x37f   : > { %5219 = vmatmul.mubr.msk.bf16.vlgmr.msra.gmra.mrb[0].mxu1 %vm446_vm0, %v6598_v10 }
 0x380   : > { %5223 = vmatpush3.bf16.msra.mxu1 %v3210_v14  ;;  %5224 = vmatprep.mubr.msk.bf16.mxu1 %vm5717_vm1, %v7666_v42  ;;  %v7225_v14 = vpop.f32.mrb[66].mxu0 }
 0x381   : > { %5228 = vmatprep.subr.bf16.mxu1 %v7666_v42  ;;  %v4927_v54 = vpop.f32.mrb[67].mxu0 }
 0x382   : > { %v7235_v18 = vpop.f32.mrb[68].mxu0 }
 0x383   : > { %v4932_v0 = vpop.f32.mrb[69].mxu0 }
 0x387   : > { %5225 = vmatmul.mubr.msk.bf16.vlgmr.msra.gmra.mrb[4].mxu1 %vm446_vm0, %v6598_v10 }
 0x388   : > { %5229 = vmatpush3.bf16.msra.mxu1 %v3211_v8  ;;  %5230 = vmatprep.mubr.msk.bf16.mxu1 %vm5717_vm1, %v7666_v42  ;;  %v7237_v8 = vpop.f32.mrb[70].mxu0 }
 0x389   : > { %5234 = vmatprep.subr.bf16.mxu1 %v7666_v42  ;;  %v4933_v24 = vpop.f32.mrb[71].mxu0 }
 0x38a   : > { %v7246_v23 = vpop.f32.mrb[72].mxu0 }
 0x38b   : > { %v4938_v31 = vpop.f32.mrb[73].mxu0 }
 0x38f   : > { %5231 = vmatmul.mubr.msk.bf16.vlgmr.msra.gmra.mrb[8].mxu1 %vm446_vm0, %v6598_v10 }
 0x390   : > { %5235 = vmatpush3.bf16.msra.mxu1 %v3212_v35  ;;  %5236 = vmatprep.mubr.msk.bf16.mxu1 %vm5717_vm1, %v7666_v42  ;;  %v7248_v35 = vpop.f32.mrb[74].mxu0 }
 0x391   : > { %5240 = vmatprep.subr.bf16.mxu1 %v7666_v42  ;;  %v4939_v27 = vpop.f32.mrb[75].mxu0 }
 0x392   : > { %v7251_v39 = vpop.f32.mrb[76].mxu0 }
 0x393   : > { %v4944_v16 = vpop.f32.mrb[77].mxu0 }
 0x397   : > { %5237 = vmatmul.mubr.msk.bf16.vlgmr.msra.gmra.mrb[12].mxu1 %vm446_vm0, %v6598_v10  ;;  %v7253_v10 = vpop.f32.mrb[78].mxu0 }
 0x398   : > { %5241 = vmatpush3.bf16.msra.mxu1 %v3213_v25  ;;  %5242 = vmatprep.mubr.msk.bf16.mxu1 %vm5717_vm1, %v7666_v42  ;;  %v4945_v5 = vpop.f32.mrb[79].mxu0 }
 0x399   : > { %v7255_v37 = vpop.f32.mrb[80].mxu0 }
 0x39a   : > { %v4950_v2 = vpop.f32.mrb[81].mxu0 }
 0x39b   : > { %v7257_v25 = vpop.f32.mrb[82].mxu0 }
 0x39c   : > { %v4951_v42 = vpop.f32.mrb[83].mxu0 }
 0x39d   : > { %v7259_v13 = vpop.f32.mrb[84].mxu0 }
 0x39e   : > { %v4956_v62 = vpop.f32.mrb[85].mxu0 }
 0x39f   : > { %5243 = vmatmul.mubr.msk.bf16.vlgmr.msra.gmra.mrb[16].mxu1 %vm446_vm0, %v5544_v47  ;;  %v7261_v15 = vpop.f32.mrb[86].mxu0 }
 0x3a0   : > { %v4957_v7 = vpop.f32.mrb[87].mxu0 }
 0x3a1   : > { %v7263_v38 = vpop.f32.mrb[88].mxu0 }
 0x3a2   : > { %v4962_v33 = vpop.f32.mrb[89].mxu0 }
 0x3a3   : > { %v7265_v17 = vpop.f32.mrb[90].mxu0 }
 0x3a4   : > { %v4963_v43 = vpop.f32.mrb[91].mxu0 }
 0x3a5   : > { %v7267_v6 = vpop.f32.mrb[92].mxu0 }
 0x3a6   : > { %v4968_v36 = vpop.f32.mrb[93].mxu0 }
 0x3a7   : > { %v7269_v48 = vpop.f32.mrb[94].mxu0 }
 0x3a8   : > { %v4969_v60 = vpop.f32.mrb[95].mxu0 }
 0x3a9   : > { %v7271_v20 = vpop.f32.mrb[96].mxu0 }
 0x3aa   : > { %v4974_v41 = vpop.f32.mrb[97].mxu0 }
 0x3ab   : > { %v7273_v45 = vpop.f32.mrb[98].mxu0 }
 0x3ac   : > { %v4975_v58 = vpop.f32.mrb[99].mxu0 }
 0x3da   : > { %v3248_v26 = vpop.f32.mrb[20].mxu1 }
 0x3db   : > { %v5246_v40 = vadd.f32 %v3248_v26, %v7089_v44  ;;  %v5130_v56 = vpop.f32.mrb[21].mxu1 }
 0x3dc   : > { %v3251_v30 = vpop.f32.mrb[22].mxu1 }
 0x3dd   : > { %v5247_v55 = vadd.f32 %v3251_v30, %v7153_v46  ;;  %v5131_v9 = vpop.f32.mrb[23].mxu1 }
 0x3df   : > { %v4075_v47 = vmul.f32 0.11111111, %v5247_v55 }
 0x3e1   : > { %v7297_v41 = vmul.f32 %v4075_v47, %v4075_v47 }
 0x3e2   : > { %v3289_v29 = vpop.f32.mrb[24].mxu1 }
 0x3e3   : > { %v5248_v1 = vadd.f32 %v3289_v29, %v7163_v57  ;;  %v5136_v52 = vpop.f32.mrb[25].mxu1 }
 0x3e4   : > { %v3292_v22 = vpop.f32.mrb[26].mxu1 }
 0x3e5   : > { %v5249_v4 = vadd.f32 %v3292_v22, %v7165_v59  ;;  %v5137_v51 = vpop.f32.mrb[27].mxu1  ;;  %v4074_v59 = vmul.f32 0.11111111, %v5246_v40 }
 0x3e7   : > { %v4162_v42 = vmul.f32 2.0, %v4074_v59  ;;  %v7289_v33 = vmul.f32 %v4074_v59, %v4074_v59  ;;  %v4077_v40 = vmul.f32 0.11111111, %v5249_v4 }
 0x3ea   : > { %v3330_v63 = vpop.f32.mrb[28].mxu1 }
 0x3eb   : > { %v5250_v11 = vadd.f32 %v3330_v63, %v7175_v32  ;;  %v5142_v50 = vpop.f32.mrb[29].mxu1 }
 0x3ec   : > { %v3333_v34 = vpop.f32.mrb[30].mxu1  ;;  %v4165_v50 = vmul.f32 2.0, %v4077_v40 }
 0x3ed   : > { %v5251_v44 = vadd.f32 %v3333_v34, %v7177_v49  ;;  %v5143_v54 = vpop.f32.mrb[31].mxu1 }
 0x3f2   : > { %v3371_v0 = vpop.f32.mrb[32].mxu1 }
 0x3f3   : > { %v7282_v46 = vadd.f32 %v3371_v0, %v7187_v19  ;;  %v5148_v24 = vpop.f32.mrb[33].mxu1  ;;  %v4163_v19 = vmul.f32 2.0, %v4075_v47 }
 0x3f4   : > { %v3374_v31 = vpop.f32.mrb[34].mxu1  ;;  %v7323_v24 = vmul.f32 %v4077_v40, %v4077_v40 }
 0x3f5   : > { %v7285_v57 = vadd.f32 %v3374_v31, %v7189_v12  ;;  %v5149_v27 = vpop.f32.mrb[35].mxu1  ;;  %v4078_v31 = vmul.f32 0.11111111, %v5250_v11 }
 0x3fa   : > { %v3412_v16 = vpop.f32.mrb[36].mxu1 }
 0x3fb   : > { %v5254_v32 = vadd.f32 %v3412_v16, %v7199_v53  ;;  %v5154_v5 = vpop.f32.mrb[37].mxu1  ;;  %v4076_v53 = vmul.f32 0.11111111, %v5248_v1 }
 0x3fc   : > { %v3415_v2 = vpop.f32.mrb[38].mxu1 }
 0x3fd   : > { %v4082_v49 = vmul.f32 0.11111111, %v5254_v32  ;;  %v5255_v62 = vadd.f32 %v3415_v2, %v7201_v28  ;;  %v5155_v7 = vpop.f32.mrb[39].mxu1  ;;  %v4164_v52 = vmul.f32 2.0, %v4076_v53  ;;  %v7315_v34 = vmul.f32 %v4076_v53, %v4076_v53 }
 0x3ff   : > { %v7291_v43 = vmul.f32 %v4162_v42, %v4082_v49  ;;  %v4083_v12 = vmul.f32 0.11111111, %v5255_v62  ;;  %v7293_v36 = vmul.f32 %v4082_v49, %v4082_v49  ;;  %v7295_v60 = vmul.f32 %v4082_v49, %v4074_v59 }
 0x400   : > { %v4166_v49 = vmul.f32 2.0, %v4078_v31 }
 0x401   : > { %v7299_v58 = vmul.f32 %v4163_v19, %v4083_v12  ;;  %v7303_v26 = vadd.f32 %v7293_v36, %v7289_v33  ;;  %v7305_v28 = vmul.f32 %v4083_v12, %v4083_v12  ;;  %v7307_v30 = vmul.f32 %v4083_v12, %v4075_v47 }
 0x402   : > { %v3453_v56 = vpop.f32.mrb[40].mxu1  ;;  %v4079_v47 = vmul.f32 0.11111111, %v5251_v44 }
 0x403   : > { %v5256_v55 = vadd.f32 %v3453_v56, %v7211_v21  ;;  %v5160_v9 = vpop.f32.mrb[41].mxu1  ;;  %v7312_v29 = vadd.f32 %v7305_v28, %v7297_v41 }
 0x404   : > { %v3456_v1 = vpop.f32.mrb[42].mxu1  ;;  %v4167_v12 = vmul.f32 2.0, %v4079_v47  ;;  %v4080_v9 = vmul.f32 0.11111111, %v7282_v46 }
 0x405   : > { %v4084_v22 = vmul.f32 0.11111111, %v5256_v55  ;;  %v5257_v51 = vadd.f32 %v3456_v1, %v7213_v3  ;;  %v5161_v63 = vpop.f32.mrb[43].mxu1  ;;  %v7349_v55 = vmul.f32 %v4079_v47, %v4079_v47 }
 0x407   : > { %v7317_v4 = vmul.f32 %v4164_v52, %v4084_v22  ;;  %v4085_v54 = vmul.f32 0.11111111, %v5257_v51  ;;  %v7319_v0 = vmul.f32 %v4084_v22, %v4084_v22  ;;  %v7321_v21 = vmul.f32 %v4084_v22, %v4076_v53 }
 0x408   : > { %v7341_v53 = vmul.f32 %v4078_v31, %v4078_v31  ;;  %v4081_v22 = vmul.f32 0.11111111, %v7285_v57 }
 0x409   : > { %v7325_v27 = vmul.f32 %v4165_v50, %v4085_v54  ;;  %v7329_v59 = vadd.f32 %v7319_v0, %v7315_v34  ;;  %v7331_v3 = vmul.f32 %v4085_v54, %v4085_v54  ;;  %v7333_v32 = vmul.f32 %v4085_v54, %v4077_v40 }
 0x40a   : > { %v3494_v16 = vpop.f32.mrb[44].mxu1 }
 0x40b   : > { %v5258_v5 = vadd.f32 %v3494_v16, %v7223_v61  ;;  %v5166_v2 = vpop.f32.mrb[45].mxu1  ;;  %v7338_v42 = vadd.f32 %v7331_v3, %v7323_v24  ;;  %v4168_v16 = vmul.f32 2.0, %v4080_v9 }
 0x40c   : > { %v3497_v11 = vpop.f32.mrb[46].mxu1 }
 0x40d   : > { %v4086_v62 = vmul.f32 0.11111111, %v5258_v5  ;;  %v5259_v7 = vadd.f32 %v3497_v11, %v7225_v14  ;;  %v5167_v19 = vpop.f32.mrb[47].mxu1 }
 0x40f   : > { %v7343_v44 = vmul.f32 %v4166_v49, %v4086_v62  ;;  %v4087_v40 = vmul.f32 0.11111111, %v5259_v7  ;;  %v7345_v56 = vmul.f32 %v4086_v62, %v4086_v62  ;;  %v7347_v61 = vmul.f32 %v4086_v62, %v4078_v31 }
 0x410   : > { %v4169_v49 = vmul.f32 2.0, %v4081_v22  ;;  %v7369_v62 = vmul.f32 %v4080_v9, %v4080_v9 }
 0x411   : > { %v7352_v1 = vmul.f32 %v4167_v12, %v4087_v40  ;;  %v7356_v14 = vadd.f32 %v7345_v56, %v7341_v53  ;;  %v7358_v52 = vmul.f32 %v4087_v40, %v4087_v40  ;;  %v7361_v63 = vmul.f32 %v4087_v40, %v4079_v47 }
 0x412   : > { %v3535_v51 = vpop.f32.mrb[48].mxu1  ;;  %v7379_v12 = vmul.f32 %v4081_v22, %v4081_v22 }
 0x413   : > { %7705 = vst [vmem:[#allocation24_spill] sm:$0xff] %v7352_v1  ;;  %v5260_v50 = vadd.f32 %v3535_v51, %v7235_v18  ;;  %v5172_v54 = vpop.f32.mrb[49].mxu1  ;;  %v7366_v31 = vadd.f32 %v7358_v52, %v7349_v55 }
 0x414   : > { %v3538_v46 = vpop.f32.mrb[50].mxu1 }
 0x415   : > { %v4088_v5 = vmul.f32 0.11111111, %v5260_v50  ;;  %v5261_v2 = vadd.f32 %v3538_v46, %v7237_v8  ;;  %v5173_v11 = vpop.f32.mrb[51].mxu1 }
 0x417   : > { %v7371_v57 = vmul.f32 %v4168_v16, %v4088_v5  ;;  %v4089_v47 = vmul.f32 0.11111111, %v5261_v2  ;;  %v7373_v7 = vmul.f32 %v4088_v5, %v4088_v5  ;;  %v7375_v18 = vmul.f32 %v4088_v5, %v4080_v9 }
 0x419   : > { %7706 = vst [vmem:[#allocation23_spill] sm:$0xff] %v7371_v57  ;;  %7707 = vst [vmem:[#allocation33_spill] sm:$0xff] %v7375_v18  ;;  %v7377_v19 = vmul.f32 %v4169_v49, %v4089_v47  ;;  %v7383_v40 = vadd.f32 %v7373_v7, %v7369_v62  ;;  %v7385_v8 = vmul.f32 %v4089_v47, %v4089_v47 }
 0x41a   : > { %v3576_v51 = vpop.f32.mrb[52].mxu1  ;;  %v7387_v50 = vmul.f32 %v4089_v47, %v4081_v22 }
 0x41b   : > { %7708 = vst [vmem:[#allocation14_spill] sm:$0xff] %v7377_v19  ;;  %v5262_v54 = vadd.f32 %v3576_v51, %v7246_v23  ;;  %v5178_v46 = vpop.f32.mrb[53].mxu1  ;;  %v7392_v9 = vadd.f32 %v7385_v8, %v7379_v12 }
 0x41c   : > { %7709 = vst [vmem:[#allocation30_spill] sm:$0xff] %v7387_v50  ;;  %v3579_v16 = vpop.f32.mrb[54].mxu1 }
 0x41d   : > { %v4090_v5 = vmul.f32 0.11111111, %v5262_v54  ;;  %v5263_v2 = vadd.f32 %v3579_v16, %v7248_v35  ;;  %v5179_v11 = vpop.f32.mrb[55].mxu1 }
 0x41f   : > { %v4106_v49 = vsub.f32 %v4090_v5, %v7289_v33  ;;  %v4091_v19 = vmul.f32 0.11111111, %v5263_v2 }
 0x421   : > { %v4107_v57 = vsub.f32 %v4091_v19, %v7297_v41 }
 0x422   : > { %v3617_v18 = vpop.f32.mrb[56].mxu1 }
 0x423   : > { %v5264_v22 = vadd.f32 %v3617_v18, %v7251_v39  ;;  %v5184_v47 = vpop.f32.mrb[57].mxu1 }
 0x424   : > { %v3620_v23 = vpop.f32.mrb[58].mxu1 }
 0x425   : > { %v4092_v51 = vmul.f32 0.11111111, %v5264_v22  ;;  %v5265_v46 = vadd.f32 %v3620_v23, %v7253_v10  ;;  %v5185_v50 = vpop.f32.mrb[59].mxu1 }
 0x427   : > { %v4108_v1 = vsub.f32 %v4092_v51, %v7315_v34  ;;  %v4093_v54 = vmul.f32 0.11111111, %v5265_v46 }
 0x429   : > { %v4109_v35 = vsub.f32 %v4093_v54, %v7323_v24 }
 0x42a   : > { %v3658_v16 = vpop.f32.mrb[60].mxu1 }
 0x42b   : > { %v5266_v33 = vadd.f32 %v3658_v16, %v7255_v37  ;;  %v5190_v5 = vpop.f32.mrb[61].mxu1 }
 0x42c   : > { %v3661_v2 = vpop.f32.mrb[62].mxu1 }
 0x42d   : > { %v4094_v41 = vmul.f32 0.11111111, %v5266_v33  ;;  %v5267_v19 = vadd.f32 %v3661_v2, %v7257_v25  ;;  %v5191_v39 = vpop.f32.mrb[63].mxu1 }
 0x42f   : > { %v4110_v18 = vsub.f32 %v4094_v41, %v7341_v53  ;;  %v7404_v11 = vmul.f32 0.11111111, %v5267_v19 }
 0x431   : > { %v4111_v10 = vsub.f32 %v7404_v11, %v7349_v55  ;;  %v4218_v11 = vadd.f32 0.0001, %v7303_v26 }
 0x432   : > { %v3699_v34 = vpop.f32.mrb[64].mxu1 }
 0x433   : > { %v5268_v50 = vadd.f32 %v3699_v34, %v7259_v13  ;;  %v5196_v24 = vpop.f32.mrb[65].mxu1 }
 0x434   : > { %v3702_v22 = vpop.f32.mrb[66].mxu1 }
 0x435   : > { %v7409_v47 = vmul.f32 0.11111111, %v5268_v50  ;;  %v5269_v37 = vadd.f32 %v3702_v22, %v7261_v15  ;;  %v5197_v23 = vpop.f32.mrb[67].mxu1  ;;  %v4219_v22 = vadd.f32 0.0001, %v7312_v29 }
 0x437   : > { %v4112_v25 = vsub.f32 %v7409_v47, %v7369_v62  ;;  %v7414_v51 = vmul.f32 0.11111111, %v5269_v37 }
 0x439   : > { %v4113_v53 = vsub.f32 %v7414_v51, %v7379_v12  ;;  %v4178_v51 = vadd.f32 0.0001, %v7291_v43 }
 0x43a   : > { %v3740_v46 = vpop.f32.mrb[68].mxu1 }
 0x43b   : > { %v5270_v55 = vadd.f32 %v3740_v46, %v7263_v38  ;;  %v5202_v54 = vpop.f32.mrb[69].mxu1 }
 0x43c   : > { %v3743_v13 = vpop.f32.mrb[70].mxu1 }
 0x43d   : > { %v4114_v16 = vmul.f32 0.11111111, %v5270_v55  ;;  %v5271_v33 = vadd.f32 %v3743_v13, %v7265_v17  ;;  %v5203_v5 = vpop.f32.mrb[71].mxu1 }
 0x43f   : > { %v4130_v15 = vsub.f32 %v4114_v16, %v7293_v36  ;;  %v4115_v2 = vmul.f32 0.11111111, %v5271_v33 }
 0x441   : > { %v4226_v41 = vadd.f32 %v4130_v15, %v4106_v49  ;;  %v4131_v19 = vsub.f32 %v4115_v2, %v7305_v28  ;;  %v4221_v15 = vadd.f32 0.0001, %v7338_v42 }
 0x442   : > { %v3781_v39 = vpop.f32.mrb[72].mxu1 }
 0x443   : > { %v4234_v34 = vadd.f32 0.0009, %v4226_v41  ;;  %v4227_v50 = vadd.f32 %v4131_v19, %v4107_v57  ;;  %v5272_v24 = vadd.f32 %v3781_v39, %v7267_v6  ;;  %v5208_v38 = vpop.f32.mrb[73].mxu1  ;;  %v4220_v6 = vadd.f32 0.0001, %v7329_v59 }
 0x444   : > { %v3784_v37 = vpop.f32.mrb[74].mxu1 }
 0x445   : > { %v4242_v23 = vmul.f32 %v4234_v34, %v4218_v11  ;;  %v4235_v17 = vadd.f32 0.0009, %v4227_v50  ;;  %v4116_v46 = vmul.f32 0.11111111, %v5272_v24  ;;  %v5273_v36 = vadd.f32 %v3784_v37, %v7269_v48  ;;  %v5209_v55 = vpop.f32.mrb[75].mxu1 }
 0x447   : > { %v4243_v49 = vmul.f32 %v4235_v17, %v4219_v22  ;;  %v4132_v28 = vsub.f32 %v4116_v46, %v7319_v0  ;;  %v4117_v54 = vmul.f32 0.11111111, %v5273_v36  ;;  %v4223_v22 = vadd.f32 0.0001, %v7366_v31 }
 0x448   : > { %5528 = vrcp.f32 %v4242_v23  ;;  %v4179_v23 = vadd.f32 0.0001, %v7299_v58 }
 0x449   : > { %v4228_v13 = vadd.f32 %v4132_v28, %v4108_v1  ;;  %v4133_v26 = vsub.f32 %v4117_v54, %v7331_v3  ;;  %v4225_v28 = vadd.f32 0.0001, %v7392_v9  ;;  %5530 = vrcp.f32 %v4243_v49 }
 0x44a   : > { %v3822_v57 = vpop.f32.mrb[76].mxu1 }
 0x44b   : > { %v4236_v16 = vadd.f32 0.0009, %v4228_v13  ;;  %v4229_v33 = vadd.f32 %v4133_v26, %v4109_v35  ;;  %v5274_v29 = vadd.f32 %v3822_v57, %v7271_v20  ;;  %v5214_v5 = vpop.f32.mrb[77].mxu1  ;;  %v4222_v35 = vadd.f32 0.0001, %v7356_v14 }
 0x44c   : > { %v3825_v2 = vpop.f32.mrb[78].mxu1 }
 0x44d   : > { %v4244_v48 = vmul.f32 %v4236_v16, %v4220_v6  ;;  %v4237_v41 = vadd.f32 0.0009, %v4229_v33  ;;  %v4118_v19 = vmul.f32 0.11111111, %v5274_v29  ;;  %v5275_v0 = vadd.f32 %v3825_v2, %v7273_v45  ;;  %v5215_v39 = vpop.f32.mrb[79].mxu1 }
 0x44f   : > { %v4245_v1 = vmul.f32 %v4237_v41, %v4221_v15  ;;  %v4134_v3 = vsub.f32 %v4118_v19, %v7345_v56  ;;  %v4119_v11 = vmul.f32 0.11111111, %v5275_v0  ;;  %5532 = vrcp.f32 %v4244_v48 }
 0x450   : > { %v4180_v48 = vadd.f32 0.0001, %v7317_v4 }
 0x451   : > { %v4230_v34 = vadd.f32 %v4134_v3, %v4110_v18  ;;  %v4135_v59 = vsub.f32 %v4119_v11, %v7358_v52  ;;  %v4224_v18 = vadd.f32 0.0001, %v7383_v40  ;;  %5534 = vrcp.f32 %v4245_v1 }
 0x452   : > { %v3863_v20 = vpop.f32.mrb[0].mxu1  ;;  %v5529_v15 = vpop.eup %5528  ;;  %v4181_v1 = vadd.f32 0.0001, %v7325_v27 }
 0x453   : > { %v4238_v50 = vadd.f32 0.0009, %v4230_v34  ;;  %v4231_v24 = vadd.f32 %v4135_v59, %v4111_v10  ;;  %v4120_v42 = vmul.f32 0.11111111, %v3863_v20  ;;  %v5220_v38 = vpop.f32.mrb[1].mxu1  ;;  %v5531_v43 = vpop.eup %5530 }
 0x454   : > { %v3866_v37 = vpop.f32.mrb[2].mxu1 }
 0x455   : > { %v4246_v17 = vmul.f32 %v4238_v50, %v4222_v35  ;;  %v4239_v45 = vadd.f32 0.0009, %v4231_v24  ;;  %v4136_v46 = vsub.f32 %v4120_v42, %v7373_v7  ;;  %v4121_v36 = vmul.f32 0.11111111, %v3866_v37  ;;  %v5221_v56 = vpop.f32.mrb[3].mxu1 }
 0x457   : > { %v4247_v55 = vmul.f32 %v4239_v45, %v4223_v22  ;;  %v4232_v52 = vadd.f32 %v4136_v46, %v4112_v25  ;;  %v4137_v14 = vsub.f32 %v4121_v36, %v7385_v8  ;;  %5536 = vrcp.f32 %v4246_v17 }
 0x459   : > { %v4240_v10 = vadd.f32 0.0009, %v4232_v52  ;;  %v4233_v31 = vadd.f32 %v4137_v14, %v4113_v53  ;;  %v5533_v37 = vpop.eup %5532  ;;  %5538 = vrcp.f32 %v4247_v55 }
 0x45a   : > { %v3904_v7 = vpop.f32.mrb[4].mxu1 }
 0x45b   : > { %v7446_v54 = vmul.f32 %v4240_v10, %v4224_v18  ;;  %v4241_v13 = vadd.f32 0.0009, %v4233_v31  ;;  %v4138_v26 = vmul.f32 0.11111111, %v3904_v7  ;;  %v5226_v57 = vpop.f32.mrb[5].mxu1  ;;  %v5535_v14 = vpop.eup %5534 }
 0x45c   : > { %v3907_v62 = vpop.f32.mrb[6].mxu1 }
 0x45d   : > { %v7448_v47 = vmul.f32 %v4241_v13, %v4225_v28  ;;  %v4154_v40 = vsub.f32 %v4138_v26, %v7295_v60  ;;  %v4139_v8 = vmul.f32 0.11111111, %v3907_v62  ;;  %v5227_v25 = vpop.f32.mrb[7].mxu1  ;;  %v4182_v26 = vadd.f32 0.0001, %v7343_v44 }
 0x45e   : > { %5540 = vrcp.f32 %v7446_v54  ;;  %v7711_v54 = vld [vmem:[#allocation33_spill] sm:$0xff] }
 0x45f   : > { %v4186_v6 = vmul.f32 2.0, %v4154_v40  ;;  %v4155_v12 = vsub.f32 %v4139_v8, %v7307_v30  ;;  %5542 = vrcp.f32 %v7448_v47 }
 0x461   : > { %v4194_v9 = vadd.f32 0.0009, %v4186_v6  ;;  %v4187_v53 = vmul.f32 2.0, %v4155_v12  ;;  %v5537_v12 = vpop.eup %5536 }
 0x462   : > { %v3945_v16 = vpop.f32.mrb[8].mxu1 }
 0x463   : > { %v4202_v33 = vmul.f32 %v4194_v9, %v4178_v51  ;;  %v4195_v49 = vadd.f32 0.0009, %v4187_v53  ;;  %v4140_v29 = vmul.f32 0.11111111, %v3945_v16  ;;  %v5232_v5 = vpop.f32.mrb[9].mxu1  ;;  %v7710_v51 = vld [vmem:[#allocation24_spill] sm:$0xff] }
 0x464   : > { %v3948_v60 = vpop.f32.mrb[10].mxu1  ;;  %v4183_v9 = vadd.f32 0.0001, %v7710_v51  ;;  %v5539_v5 = vpop.eup %5538 }
 0x465   : > { %v4251_v2 = vmul.f32 %v5529_v15, %v4202_v33  ;;  %v4203_v41 = vmul.f32 %v4195_v49, %v4179_v23  ;;  %v4156_v19 = vsub.f32 %v4140_v29, %v7321_v21  ;;  %v4141_v30 = vmul.f32 0.11111111, %v3948_v60  ;;  %v5233_v0 = vpop.f32.mrb[11].mxu1 }
 0x467   : > { %v4266_v39 = vsub.f32 1.0, %v4251_v2  ;;  %v4253_v3 = vmul.f32 %v5531_v43, %v4203_v41  ;;  %v4188_v11 = vmul.f32 2.0, %v4156_v19  ;;  %v4157_v58 = vsub.f32 %v4141_v30, %v7333_v32  ;;  %v7712_v19 = vld [vmem:[#allocation30_spill] sm:$0xff]  ;;  %v7713_v43 = vld [vmem:[#allocation23_spill] sm:$0xff] }
 0x469   : > { %v4274_v34 = vmul.f32 0.5, %v4266_v39  ;;  %v4267_v59 = vsub.f32 1.0, %v4253_v3  ;;  %v4196_v35 = vadd.f32 0.0009, %v4188_v11  ;;  %v4189_v20 = vmul.f32 2.0, %v4157_v58 }
 0x46a   : > { %v3986_v50 = vpop.f32.mrb[12].mxu1  ;;  %v4184_v39 = vadd.f32 0.0001, %v7713_v43 }
 0x46b   : > { %v4282_v24 = vmax.f32 %v4274_v34, 0.0  ;;  %v4275_v21 = vmul.f32 0.5, %v4267_v59  ;;  %v4204_v42 = vmul.f32 %v4196_v35, %v4180_v48  ;;  %v4197_v38 = vadd.f32 0.0009, %v4189_v20  ;;  %v5238_v22 = vpop.f32.mrb[13].mxu1  ;;  %v7714_v34 = vld [vmem:[#allocation14_spill] sm:$0xff] }
 0x46c   : > { %v4142_v45 = vmul.f32 0.11111111, %v3986_v50  ;;  %v3989_v32 = vpop.f32.mrb[14].mxu1  ;;  %v4185_v59 = vadd.f32 0.0001, %v7714_v34 }
 0x46d   : > { %v4290_v46 = vmin.f32 %v4282_v24, 1.0  ;;  %v4283_v4 = vmax.f32 %v4275_v21, 0.0  ;;  %v4255_v36 = vmul.f32 %v5533_v37, %v4204_v42  ;;  %v4205_v56 = vmul.f32 %v4197_v38, %v4181_v1  ;;  %v5239_v52 = vpop.f32.mrb[15].mxu1  ;;  %v5541_v1 = vpop.eup %5540 }
 0x46e   : > { %v4158_v27 = vsub.f32 %v4142_v45, %v7347_v61  ;;  %v4143_v17 = vmul.f32 0.11111111, %v3989_v32  ;;  %v5543_v38 = vpop.eup %5542 }
 0x46f   : > { %4298 = vst.msk [vmem:[%s7460_s21] sm:$0xff] %vm446_vm0, %v4290_v46  ;;  %v4291_v18 = vmin.f32 %v4283_v4, 1.0  ;;  %v4268_v10 = vsub.f32 1.0, %v4255_v36  ;;  %v4257_v55 = vmul.f32 %v5535_v14, %v4205_v56 }
 0x470   : > { %v4190_v31 = vmul.f32 2.0, %v4158_v27  ;;  %v4159_v28 = vsub.f32 %v4143_v17, %v7361_v63 }
 0x471   : > { %4299 = vst.msk [vmem:[%s7460_s21 + $0x8] sm:$0xff] %vm446_vm0, %v4291_v18  ;;  %v4276_v7 = vmul.f32 0.5, %v4268_v10  ;;  %v4269_v13 = vsub.f32 1.0, %v4257_v55 }
 0x472   : > { %v4198_v61 = vadd.f32 0.0009, %v4190_v31  ;;  %v4191_v57 = vmul.f32 2.0, %v4159_v28  ;;  %v4027_v62 = vpop.f32.mrb[16].mxu1 }
 0x473   : > { %v4284_v40 = vmax.f32 %v4276_v7, 0.0  ;;  %v4277_v8 = vmul.f32 0.5, %v4269_v13  ;;  %v4144_v25 = vmul.f32 0.11111111, %v4027_v62  ;;  %v5244_v6 = vpop.f32.mrb[17].mxu1 }
 0x474   : > { %v4206_v63 = vmul.f32 %v4198_v61, %v4182_v26  ;;  %v4199_v53 = vadd.f32 0.0009, %v4191_v57  ;;  %v4030_v23 = vpop.f32.mrb[18].mxu1 }
 0x475   : > { %v4292_v44 = vmin.f32 %v4284_v40, 1.0  ;;  %v4285_v16 = vmax.f32 %v4277_v8, 0.0  ;;  %v4160_v33 = vsub.f32 %v4144_v25, %v7711_v54  ;;  %v4145_v49 = vmul.f32 0.11111111, %v4030_v23  ;;  %v5245_v29 = vpop.f32.mrb[19].mxu1 }
 0x476   : > { %v4259_v15 = vmul.f32 %v5537_v12, %v4206_v63  ;;  %v4207_v60 = vmul.f32 %v4199_v53, %v4183_v9 }
 0x477   : > { %4300 = vst.msk [vmem:[%s7460_s21 + $0x10] sm:$0xff] %vm446_vm0, %v4292_v44  ;;  %v4293_v2 = vmin.f32 %v4285_v16, 1.0  ;;  %v4192_v41 = vmul.f32 2.0, %v4160_v33  ;;  %v4161_v30 = vsub.f32 %v4145_v49, %v7712_v19 }
 0x478   : > { %v4270_v47 = vsub.f32 1.0, %v4259_v15  ;;  %v4261_v0 = vmul.f32 %v5539_v5, %v4207_v60 }
 0x479   : > { %4301 = vst.msk [vmem:[%s7460_s21 + $0x18] sm:$0xff] %vm446_vm0, %v4293_v2  ;;  %v4200_v3 = vadd.f32 0.0009, %v4192_v41  ;;  %v4193_v11 = vmul.f32 2.0, %v4161_v30 }
 0x47a   : > { %v4278_v58 = vmul.f32 0.5, %v4270_v47  ;;  %v4271_v48 = vsub.f32 1.0, %v4261_v0 }
 0x47b   : > { %v4208_v35 = vmul.f32 %v4200_v3, %v4184_v39  ;;  %v4201_v20 = vadd.f32 0.0009, %v4193_v11 }
 0x47c   : > { %v4286_v50 = vmax.f32 %v4278_v58, 0.0  ;;  %v4279_v24 = vmul.f32 0.5, %v4271_v48 }
 0x47d   : > { %v4263_v21 = vmul.f32 %v5541_v1, %v4208_v35  ;;  %v4209_v42 = vmul.f32 %v4201_v20, %v4185_v59 }
 0x47e   : > { %v4294_v22 = vmin.f32 %v4286_v50, 1.0  ;;  %v4287_v37 = vmax.f32 %v4279_v24, 0.0 }
 0x47f   : > { %v4272_v45 = vsub.f32 1.0, %v4263_v21  ;;  %v4265_v32 = vmul.f32 %v5543_v38, %v4209_v42 }
 0x480   : > { %4302 = vst.msk [vmem:[%s7460_s21 + $0x20] sm:$0xff] %vm446_vm0, %v4294_v22  ;;  %v4295_v46 = vmin.f32 %v4287_v37, 1.0 }
 0x481   : > { %v4280_v4 = vmul.f32 0.5, %v4272_v45  ;;  %v4273_v36 = vsub.f32 1.0, %v4265_v32 }
 0x482   : > { %4303 = vst.msk [vmem:[%s7460_s21 + $0x28] sm:$0xff] %vm446_vm0, %v4295_v46 }
 0x483   : > { %v4288_v56 = vmax.f32 %v4280_v4, 0.0  ;;  %v4281_v52 = vmul.f32 0.5, %v4273_v36 }
 0x485   : > { %v4296_v14 = vmin.f32 %v4288_v56, 1.0  ;;  %v4289_v27 = vmax.f32 %v4281_v52, 0.0 }
 0x487   : > { %4304 = vst.msk [vmem:[%s7460_s21 + $0x30] sm:$0xff] %vm446_vm0, %v4296_v14  ;;  %v4297_v17 = vmin.f32 %v4289_v27, 1.0 }
 0x489   : > { %4305 = vst.msk [vmem:[%s7460_s21 + $0x38] sm:$0xff] %vm446_vm0, %v4297_v17 }
 0x48a   : > { %5646 = shalt.err (!%p5643_p6)
}
 0x48b   : > { %s5647_s9 = scalar_lea.hbm %s7488_s7, 1024  ;;  %s5651_s11 = scalar_lea.hbm %s7542_s4, 2048 }
 0x48c   : > { %p5648_p8 = scmp.ne.s32.totalorder %s7488_s7, %s5647_s9  ;;  %p5652_p4 = scmp.lt.u32.totalorder %s7488_s7, %s7542_s4 }
 0x48d   : > { %p5653_p11 = scmp.lt.u32.totalorder %s5651_s11, %s5647_s9  ;;  %p5655_p3 = scmp.lt.u32.totalorder %s5647_s9, %s7488_s7 }
 0x48e   : > { %p5649_p10 = pnand %p5648_p8, %p5837_p12 }
 0x48f   : > { %p5654_p13 = por %p5653_p11, %p5652_p4 }
 0x490   : > { %p5650_p0 = pneg %p5649_p10 }
 0x491   : > { %p5656_p7 = por %p5655_p3, %p5654_p13 }
 0x493   : > { %p5657_p9 = pnand %p5656_p7, %p5650_p0 }
 0x495   : > { %5660 = shalt.err (!%p5657_p9)
}
 0x496   : > { %s5719_s8 = smov 128   ;;  %s5720_s21 = smov 8  }
 0x497   : > { %5464 = dma.vmem_to_hbm [thread:$0]  (%p5837_p12), %s7490_s29, 1024, %s7488_s7, %s4307_s20, %s5719_s8, %s5719_s8, %s5720_s21  }
 0x498 PF: > { %s4336_s12 = sand.u32 1, %s5695_s15   ;;  %p7715_p1 = scmp.ne.s32.totalorder %s7589_s22, 0 }
 0x499   : > { %p7716_p5 = scmp.ge.s32.totalorder %s5707_s18, 2  ;;  %s4337_s10 = scalar_lea.sflag [#allocation4], %s4336_s12 }
 0x49b   : > { %p5478_p2 = pnand %p7716_p5, %p7715_p1 }
 0x49d   : > { %5690 = dma.done.wait (!%p5478_p2), %s4337_s10, 1024  }
 0x49e   : > { %5692 = vsyncadd (!%p5478_p2), %s4337_s10, 4294966272  ;;  %p20_p6 = scmp.ge.s32.totalorder %s5802_s27, 4   ;;  %s7717_s15 = smov %s5699_s16 }
 0x49f   : > { %s7718_s16 = smov %s5703_s17  ;;  %s7719_s17 = smov %s5833_s24 }
 0x4a0   : > { %s7720_s18 = smov %s5802_s27  ;;  %22 = sbr.rel (!%p20_p6) target bundleno = 9 (0x9), region = 98 }
 0x4a7   :  { %4342 = vsyncpa [#allocation3], 1 }
 0x4a8   :  { %4344 = vsyncpa [#allocation3 + $0x1], 1 }
 0x4a9   :  { %4345 = vsyncpa [#allocation6], 1 }
 0x4aa   :  { %4347 = vsyncpa [#allocation6 + $0x1], 1 }
 0x4ab   :  { %4348 = vsyncpa [#allocation4], 1 }
 0x4ac   :  { %4350 = vsyncpa [#allocation4 + $0x1], 1 }

</bundles_post_ra>
